<compile_context>
chip_gen: v5e
topology: v5e:2x2
jax: 0.10.0
libtpu: 0.0.40
codegen_flags: <defaults>
</compile_context>

<pallas_src>
import jax
import jax.numpy as jnp
from jax.experimental import pallas as pl
from jax.experimental.pallas import tpu as pltpu


def _round_up(x, m):
    return ((x + m - 1) // m) * m


def _vmem_capacity_bytes():
    """Generation-aware VMEM capacity (64 MiB/TC on v7x, 128 MiB on v5e/v6e)."""
    try:
        cap = getattr(pltpu.get_tpu_info(), "vmem_capacity_bytes", None)
        if cap:
            return int(cap)
    except Exception:
        pass
    return 64 * 1024 * 1024      # conservative fallback (v7x per-TensorCore)


def _pick_tile_h(N, H, W, Cin, Cout, in_bytes, out_bytes, vmem_cap):
    """Largest row tile (divisor of H, multiple of 8 or H itself) fitting VMEM.

    Footprint accounting includes the 128-lane padding of the minor dim and the
    pipeline's double buffering (the review's v7x concern), so we never request
    a tile that cannot actually be resident.
    """
    budget = (vmem_cap * 3) // 5                 # headroom for compiler scratch
    lane_in = _round_up(W, 128)
    lane_out = _round_up(2 * W, 128)

    def footprint(th):
        in_blk = Cin * _round_up(th, 8) * lane_in * in_bytes
        out_blk = Cout * _round_up(2 * th, 8) * lane_out * out_bytes
        return 2 * (in_blk + out_blk)            # double-buffered in + out blocks

    cands = sorted({H} | {d for d in range(8, H + 1, 8) if H % d == 0},
                   reverse=True)
    if N == 1:
        # Keep >= 2 grid steps so both v7x TensorCores get work.
        multi = [t for t in cands if H // t >= 2]
        if multi:
            cands = multi
    for th in cands:
        if footprint(th) <= budget:
            return th
    return cands[-1]                             # best effort (tiny H / huge W)


def _conv1x1_bn_lrelu_up_kernel(x_ref, w_ref, b_ref, o_ref):
    """Fused 1x1 conv + folded BN + LeakyReLU(0.1) + 2x nearest upsample.

    x_ref: (Cin, tile_h, W)        VMEM input block (NCHW, batch dim squeezed)
    w_ref: (Cout, Cin)             SMEM conv weight with BN scale folded in
    b_ref: (Cout,)                 SMEM folded BN bias = beta - mean * scale
    o_ref: (Cout, 2*tile_h, 2*W)   VMEM output block (NCHW, batch dim squeezed)
    """
    cin, th, w = x_ref.shape
    cout = o_ref.shape[0]

    # 0/1 duplication matrices: the nearest-neighbour 2x upsample becomes two
    # small matmuls on the otherwise-idle MXU.  dup_w[i, j] = 1 iff j//2 == i,
    # dup_h[r, c] = 1 iff r//2 == c.  This sidesteps lane/sublane interleave
    # reshapes, which are relayout-heavy for Mosaic, and is exact in f32.
    col = jax.lax.broadcasted_iota(jnp.int32, (w, 2 * w), 1)
    row = jax.lax.broadcasted_iota(jnp.int32, (w, 2 * w), 0)
    dup_w = jnp.logical_or(col == 2 * row, col == 2 * row + 1).astype(jnp.float32)

    orow = jax.lax.broadcasted_iota(jnp.int32, (2 * th, th), 0)
    ocol = jax.lax.broadcasted_iota(jnp.int32, (2 * th, th), 1)
    dup_h = jnp.logical_or(orow == 2 * ocol, orow == 2 * ocol + 1).astype(jnp.float32)

    # TODO(synk): for production channel counts (Cin, Cout >= 128) switch to a
    # pixel-major MXU matmul over channels instead of this unrolled plane-sum.
    for co in range(cout):
        acc = x_ref[0].astype(jnp.float32) * w_ref[co, 0]
        for ci in range(1, cin):
            acc = acc + x_ref[ci].astype(jnp.float32) * w_ref[co, ci]
        y = acc + b_ref[co]
        y = jnp.where(y > 0, y, 0.1 * y)                              # LeakyReLU(0.1)
        y = jnp.dot(y, dup_w, preferred_element_type=jnp.float32)     # (th, 2W)
        y = jnp.dot(dup_h, y, preferred_element_type=jnp.float32)     # (2th, 2W)
        o_ref[co] = y.astype(o_ref.dtype)


def upsample_forward(x_nchw, weight_oi, gamma, beta, running_mean, running_var,
                     eps=1e-5, *, tile_h=None, out_dtype=None):
    """Forward pass of Upsample(in_channels, out_channels).

    x_nchw:    (N, Cin, H, W)
    weight_oi: (Cout, Cin) -- torch Conv2d weight (Cout, Cin, 1, 1) squeezed.
    Returns:   (N, Cout, 2H, 2W) in NCHW (no wrapper transposes).
    """
    N, Cin, H, W = x_nchw.shape
    Cout = weight_oi.shape[0]
    if out_dtype is None:
        # TODO(synk): default to bfloat16 when the surrounding model tolerates
        # it -- the 4x-upsampled output dominates the HBM byte count.
        out_dtype = x_nchw.dtype

    # ---- Fold BatchNorm (inference / running-stats form) into the conv ----
    scale = (gamma / jnp.sqrt(running_var + eps)).astype(jnp.float32)       # (Cout,)
    w_folded = weight_oi.astype(jnp.float32) * scale[:, None]               # (Cout, Cin)
    b_folded = (beta - running_mean * scale).astype(jnp.float32)            # (Cout,)

    in_bytes = jnp.dtype(x_nchw.dtype).itemsize
    out_bytes = jnp.dtype(out_dtype).itemsize
    vmem_cap = _vmem_capacity_bytes()
    if tile_h is None:
        tile_h = _pick_tile_h(N, H, W, Cin, Cout, in_bytes, out_bytes, vmem_cap)
    assert H % tile_h == 0, (H, tile_h)

    grid = (N, H // tile_h)
    vmem_limit = max(32 << 20, min(vmem_cap - (4 << 20), 100 << 20))

    cost = pl.CostEstimate(
        flops=2 * N * H * W * Cin * Cout,
        transcendentals=0,
        bytes_accessed=(x_nchw.size * in_bytes + w_folded.size * 4 + b_folded.size * 4
                        + N * Cout * 4 * H * W * out_bytes),
    )

    return pl.pallas_call(
        _conv1x1_bn_lrelu_up_kernel,
        out_shape=jax.ShapeDtypeStruct((N, Cout, 2 * H, 2 * W), out_dtype),
        grid_spec=pltpu.PrefetchScalarGridSpec(
            num_scalar_prefetch=0,
            grid=grid,
            in_specs=[
                # One (Cin, tile_h, W) NCHW slab per grid step (contiguous rows
                # per channel plane in HBM).
                pl.BlockSpec((None, Cin, tile_h, W), lambda n, i: (n, 0, i, 0)),
                # Tiny folded weight / bias live in SMEM as scalars.
                pl.BlockSpec(memory_space=pltpu.MemorySpace.SMEM),
                pl.BlockSpec(memory_space=pltpu.MemorySpace.SMEM),
            ],
            # The full 2x-upsampled block is written once per step -> one
            # linear DMA per channel plane slab, lane dim = 2W.
            out_specs=pl.BlockSpec((None, Cout, 2 * tile_h, 2 * W),
                                   lambda n, i: (n, 0, i, 0)),
        ),
        compiler_params=pltpu.CompilerParams(
            dimension_semantics=("parallel", "parallel"),
            vmem_limit_bytes=int(vmem_limit),
        ),
        cost_estimate=cost,
    )(x_nchw, w_folded, b_folded)


def _reference_forward(x_nchw, weight_oi, gamma, beta, running_mean, running_var,
                       eps=1e-5):
    # Pure-JAX reference for sanity checking.
    y = jnp.einsum('nchw,oc->nohw', x_nchw, weight_oi)
    scale = gamma / jnp.sqrt(running_var + eps)
    bias = beta - running_mean * scale
    y = y * scale[None, :, None, None] + bias[None, :, None, None]
    y = jnp.where(y > 0, y, 0.1 * y)
    y = jnp.repeat(jnp.repeat(y, 2, axis=2), 2, axis=3)
    return y


if __name__ == "__main__":
    key = jax.random.PRNGKey(0)
    k_x, k_w, k_g, k_b, k_m, k_v = jax.random.split(key, 6)

    N, Cin, Cout, H, W = 2, 4, 8, 16, 16

    x = jax.random.normal(k_x, (N, Cin, H, W), dtype=jnp.float32)
    # Conv2d(in, out, 1, bias=False): weight (Cout, Cin, 1, 1) -> (Cout, Cin)
    weight = jax.random.normal(k_w, (Cout, Cin), dtype=jnp.float32) * 0.1
    # Non-trivial BatchNorm stats (inference / running-stats semantics).
    gamma = 1.0 + 0.1 * jax.random.normal(k_g, (Cout,), dtype=jnp.float32)
    beta = 0.05 * jax.random.normal(k_b, (Cout,), dtype=jnp.float32)
    running_mean = 0.1 * jax.random.normal(k_m, (Cout,), dtype=jnp.float32)
    running_var = 0.5 + jnp.abs(jax.random.normal(k_v, (Cout,), dtype=jnp.float32)) * 0.5

    out = upsample_forward(x, weight, gamma, beta, running_mean, running_var)
    out = jax.block_until_ready(out)

    ref = _reference_forward(x, weight, gamma, beta, running_mean, running_var)
    assert out.shape == (N, Cout, 2 * H, 2 * W), out.shape
    max_err = float(jnp.max(jnp.abs(out - ref)))
    assert jnp.allclose(out, ref, atol=1e-4, rtol=1e-4), f"mismatch vs reference: {max_err}"

    print("KERNEL_OK")
</pallas_src>

<mosaic_0001>
module attributes {stable_mosaic.version = 11 : i64} {
  func.func @_conv1x1_bn_lrelu_up_kernel(%arg0: i32, %arg1: i32, %arg2: memref<1x4x16x16xf32, #tpu.memory_space<vmem>>, %arg3: memref<8x4xf32, #tpu.memory_space<smem>>, %arg4: memref<8xf32, #tpu.memory_space<smem>>, %arg5: memref<1x8x32x32xf32, #tpu.memory_space<vmem>>) attributes {dimension_semantics = [#tpu.dimension_semantics<parallel>, #tpu.dimension_semantics<parallel>], iteration_bounds = array<i64: 2, 1>, scalar_prefetch = 0 : i64, scratch_operands = 0 : i64, tpu.core_type = #tpu.core_type<tc>, window_params = [{transform_indices = @transform_0, window_bounds = array<i64: 1, 4, 16, 16>}, {transform_indices = @transform_1, window_bounds = array<i64: 8, 4>}, {transform_indices = @transform_2, window_bounds = array<i64: 8>}, {transform_indices = @transform_3, window_bounds = array<i64: 1, 8, 32, 32>}]} {
    %0 = tpu.iota {dimensions = array<i32: 1>} : vector<16x32xi32>
    %1 = tpu.iota {dimensions = array<i32: 0>} : vector<16x32xi32>
    %c2_i32 = arith.constant 2 : i32
    %2 = vector.broadcast %c2_i32 : i32 to vector<16x32xi32>
    %3 = arith.muli %2, %1 : vector<16x32xi32>
    %4 = arith.cmpi eq, %0, %3 : vector<16x32xi32>
    %c2_i32_0 = arith.constant 2 : i32
    %5 = vector.broadcast %c2_i32_0 : i32 to vector<16x32xi32>
    %6 = arith.muli %5, %1 : vector<16x32xi32>
    %c1_i32 = arith.constant 1 : i32
    %7 = vector.broadcast %c1_i32 : i32 to vector<16x32xi32>
    %8 = arith.addi %6, %7 : vector<16x32xi32>
    %9 = arith.cmpi eq, %0, %8 : vector<16x32xi32>
    %10 = arith.ori %4, %9 : vector<16x32xi1>
    %11 = arith.extui %10 : vector<16x32xi1> to vector<16x32xi32>
    %12 = arith.sitofp %11 : vector<16x32xi32> to vector<16x32xf32>
    %13 = tpu.iota {dimensions = array<i32: 0>} : vector<32x16xi32>
    %14 = tpu.iota {dimensions = array<i32: 1>} : vector<32x16xi32>
    %c2_i32_1 = arith.constant 2 : i32
    %15 = vector.broadcast %c2_i32_1 : i32 to vector<32x16xi32>
    %16 = arith.muli %15, %14 : vector<32x16xi32>
    %17 = arith.cmpi eq, %13, %16 : vector<32x16xi32>
    %c2_i32_2 = arith.constant 2 : i32
    %18 = vector.broadcast %c2_i32_2 : i32 to vector<32x16xi32>
    %19 = arith.muli %18, %14 : vector<32x16xi32>
    %c1_i32_3 = arith.constant 1 : i32
    %20 = vector.broadcast %c1_i32_3 : i32 to vector<32x16xi32>
    %21 = arith.addi %19, %20 : vector<32x16xi32>
    %22 = arith.cmpi eq, %13, %21 : vector<32x16xi32>
    %23 = arith.ori %17, %22 : vector<32x16xi1>
    %24 = arith.extui %23 : vector<32x16xi1> to vector<32x16xi32>
    %25 = arith.sitofp %24 : vector<32x16xi32> to vector<32x16xf32>
    %c0 = arith.constant 0 : index
    %c0_4 = arith.constant 0 : index
    %c0_5 = arith.constant 0 : index
    %c0_6 = arith.constant 0 : index
    %26 = vector.load %arg2[%c0, %c0_4, %c0_5, %c0_6] : memref<1x4x16x16xf32, #tpu.memory_space<vmem>>, vector<1x1x16x16xf32>
    %27 = vector.shape_cast %26 : vector<1x1x16x16xf32> to vector<16x16xf32>
    %c0_7 = arith.constant 0 : index
    %c0_8 = arith.constant 0 : index
    %28 = memref.load %arg3[%c0_7, %c0_8] : memref<8x4xf32, #tpu.memory_space<smem>>
    %29 = vector.broadcast %28 : f32 to vector<16x16xf32>
    %30 = arith.mulf %27, %29 : vector<16x16xf32>
    %c0_9 = arith.constant 0 : index
    %c1 = arith.constant 1 : index
    %c0_10 = arith.constant 0 : index
    %c0_11 = arith.constant 0 : index
    %31 = vector.load %arg2[%c0_9, %c1, %c0_10, %c0_11] : memref<1x4x16x16xf32, #tpu.memory_space<vmem>>, vector<1x1x16x16xf32>
    %32 = vector.shape_cast %31 : vector<1x1x16x16xf32> to vector<16x16xf32>
    %c0_12 = arith.constant 0 : index
    %c1_13 = arith.constant 1 : index
    %33 = memref.load %arg3[%c0_12, %c1_13] : memref<8x4xf32, #tpu.memory_space<smem>>
    %34 = vector.broadcast %33 : f32 to vector<16x16xf32>
    %35 = arith.mulf %32, %34 : vector<16x16xf32>
    %36 = arith.addf %30, %35 : vector<16x16xf32>
    %c0_14 = arith.constant 0 : index
    %c2 = arith.constant 2 : index
    %c0_15 = arith.constant 0 : index
    %c0_16 = arith.constant 0 : index
    %37 = vector.load %arg2[%c0_14, %c2, %c0_15, %c0_16] : memref<1x4x16x16xf32, #tpu.memory_space<vmem>>, vector<1x1x16x16xf32>
    %38 = vector.shape_cast %37 : vector<1x1x16x16xf32> to vector<16x16xf32>
    %c0_17 = arith.constant 0 : index
    %c2_18 = arith.constant 2 : index
    %39 = memref.load %arg3[%c0_17, %c2_18] : memref<8x4xf32, #tpu.memory_space<smem>>
    %40 = vector.broadcast %39 : f32 to vector<16x16xf32>
    %41 = arith.mulf %38, %40 : vector<16x16xf32>
    %42 = arith.addf %36, %41 : vector<16x16xf32>
    %c0_19 = arith.constant 0 : index
    %c3 = arith.constant 3 : index
    %c0_20 = arith.constant 0 : index
    %c0_21 = arith.constant 0 : index
    %43 = vector.load %arg2[%c0_19, %c3, %c0_20, %c0_21] : memref<1x4x16x16xf32, #tpu.memory_space<vmem>>, vector<1x1x16x16xf32>
    %44 = vector.shape_cast %43 : vector<1x1x16x16xf32> to vector<16x16xf32>
    %c0_22 = arith.constant 0 : index
    %c3_23 = arith.constant 3 : index
    %45 = memref.load %arg3[%c0_22, %c3_23] : memref<8x4xf32, #tpu.memory_space<smem>>
    %46 = vector.broadcast %45 : f32 to vector<16x16xf32>
    %47 = arith.mulf %44, %46 : vector<16x16xf32>
    %48 = arith.addf %42, %47 : vector<16x16xf32>
    %c0_24 = arith.constant 0 : index
    %49 = memref.load %arg4[%c0_24] : memref<8xf32, #tpu.memory_space<smem>>
    %50 = vector.broadcast %49 : f32 to vector<16x16xf32>
    %51 = arith.addf %48, %50 : vector<16x16xf32>
    %cst = arith.constant 0.000000e+00 : f32
    %52 = vector.broadcast %cst : f32 to vector<16x16xf32>
    %53 = arith.cmpf ogt, %51, %52 : vector<16x16xf32>
    %cst_25 = arith.constant 1.000000e-01 : f32
    %54 = vector.broadcast %cst_25 : f32 to vector<16x16xf32>
    %55 = arith.mulf %54, %51 : vector<16x16xf32>
    %56 = arith.select %53, %51, %55 : vector<16x16xi1>, vector<16x16xf32>
    %cst_26 = arith.constant dense<0.000000e+00> : vector<16x32xf32>
    %57 = tpu.matmul %56, %12, %cst_26 {dimension_numbers = #tpu.dot_dimension_numbers<[1], [0], [0], [1], [0, 0, 1, 1], [], []>} : vector<16x16xf32>, vector<16x32xf32>, vector<16x32xf32> -> vector<16x32xf32>
    %cst_27 = arith.constant dense<0.000000e+00> : vector<32x32xf32>
    %58 = tpu.matmul %25, %57, %cst_27 {dimension_numbers = #tpu.dot_dimension_numbers<[1], [0], [0], [1], [0, 0, 1, 1], [], []>} : vector<32x16xf32>, vector<16x32xf32>, vector<32x32xf32> -> vector<32x32xf32>
    %c0_28 = arith.constant 0 : index
    %c0_29 = arith.constant 0 : index
    %c0_30 = arith.constant 0 : index
    %c0_31 = arith.constant 0 : index
    %59 = vector.load %arg5[%c0_28, %c0_29, %c0_30, %c0_31] : memref<1x8x32x32xf32, #tpu.memory_space<vmem>>, vector<1x1x32x32xf32>
    %60 = vector.shape_cast %59 : vector<1x1x32x32xf32> to vector<32x32xf32>
    %61 = vector.shape_cast %58 : vector<32x32xf32> to vector<1x1x32x32xf32>
    tpu.vector_store %arg5[%c0_28, %c0_29, %c0_30, %c0_31], %61 {strides = array<i32>} : memref<1x8x32x32xf32, #tpu.memory_space<vmem>>, vector<1x1x32x32xf32>,
    %c0_32 = arith.constant 0 : index
    %c0_33 = arith.constant 0 : index
    %c0_34 = arith.constant 0 : index
    %c0_35 = arith.constant 0 : index
    %62 = vector.load %arg2[%c0_32, %c0_33, %c0_34, %c0_35] : memref<1x4x16x16xf32, #tpu.memory_space<vmem>>, vector<1x1x16x16xf32>
    %63 = vector.shape_cast %62 : vector<1x1x16x16xf32> to vector<16x16xf32>
    %c1_36 = arith.constant 1 : index
    %c0_37 = arith.constant 0 : index
    %64 = memref.load %arg3[%c1_36, %c0_37] : memref<8x4xf32, #tpu.memory_space<smem>>
    %65 = vector.broadcast %64 : f32 to vector<16x16xf32>
    %66 = arith.mulf %63, %65 : vector<16x16xf32>
    %c0_38 = arith.constant 0 : index
    %c1_39 = arith.constant 1 : index
    %c0_40 = arith.constant 0 : index
    %c0_41 = arith.constant 0 : index
    %67 = vector.load %arg2[%c0_38, %c1_39, %c0_40, %c0_41] : memref<1x4x16x16xf32, #tpu.memory_space<vmem>>, vector<1x1x16x16xf32>
    %68 = vector.shape_cast %67 : vector<1x1x16x16xf32> to vector<16x16xf32>
    %c1_42 = arith.constant 1 : index
    %c1_43 = arith.constant 1 : index
    %69 = memref.load %arg3[%c1_42, %c1_43] : memref<8x4xf32, #tpu.memory_space<smem>>
    %70 = vector.broadcast %69 : f32 to vector<16x16xf32>
    %71 = arith.mulf %68, %70 : vector<16x16xf32>
    %72 = arith.addf %66, %71 : vector<16x16xf32>
    %c0_44 = arith.constant 0 : index
    %c2_45 = arith.constant 2 : index
    %c0_46 = arith.constant 0 : index
    %c0_47 = arith.constant 0 : index
    %73 = vector.load %arg2[%c0_44, %c2_45, %c0_46, %c0_47] : memref<1x4x16x16xf32, #tpu.memory_space<vmem>>, vector<1x1x16x16xf32>
    %74 = vector.shape_cast %73 : vector<1x1x16x16xf32> to vector<16x16xf32>
    %c1_48 = arith.constant 1 : index
    %c2_49 = arith.constant 2 : index
    %75 = memref.load %arg3[%c1_48, %c2_49] : memref<8x4xf32, #tpu.memory_space<smem>>
    %76 = vector.broadcast %75 : f32 to vector<16x16xf32>
    %77 = arith.mulf %74, %76 : vector<16x16xf32>
    %78 = arith.addf %72, %77 : vector<16x16xf32>
    %c0_50 = arith.constant 0 : index
    %c3_51 = arith.constant 3 : index
    %c0_52 = arith.constant 0 : index
    %c0_53 = arith.constant 0 : index
    %79 = vector.load %arg2[%c0_50, %c3_51, %c0_52, %c0_53] : memref<1x4x16x16xf32, #tpu.memory_space<vmem>>, vector<1x1x16x16xf32>
    %80 = vector.shape_cast %79 : vector<1x1x16x16xf32> to vector<16x16xf32>
    %c1_54 = arith.constant 1 : index
    %c3_55 = arith.constant 3 : index
    %81 = memref.load %arg3[%c1_54, %c3_55] : memref<8x4xf32, #tpu.memory_space<smem>>
    %82 = vector.broadcast %81 : f32 to vector<16x16xf32>
    %83 = arith.mulf %80, %82 : vector<16x16xf32>
    %84 = arith.addf %78, %83 : vector<16x16xf32>
    %c1_56 = arith.constant 1 : index
    %85 = memref.load %arg4[%c1_56] : memref<8xf32, #tpu.memory_space<smem>>
    %86 = vector.broadcast %85 : f32 to vector<16x16xf32>
    %87 = arith.addf %84, %86 : vector<16x16xf32>
    %cst_57 = arith.constant 0.000000e+00 : f32
    %88 = vector.broadcast %cst_57 : f32 to vector<16x16xf32>
    %89 = arith.cmpf ogt, %87, %88 : vector<16x16xf32>
    %cst_58 = arith.constant 1.000000e-01 : f32
    %90 = vector.broadcast %cst_58 : f32 to vector<16x16xf32>
    %91 = arith.mulf %90, %87 : vector<16x16xf32>
    %92 = arith.select %89, %87, %91 : vector<16x16xi1>, vector<16x16xf32>
    %cst_59 = arith.constant dense<0.000000e+00> : vector<16x32xf32>
    %93 = tpu.matmul %92, %12, %cst_59 {dimension_numbers = #tpu.dot_dimension_numbers<[1], [0], [0], [1], [0, 0, 1, 1], [], []>} : vector<16x16xf32>, vector<16x32xf32>, vector<16x32xf32> -> vector<16x32xf32>
    %cst_60 = arith.constant dense<0.000000e+00> : vector<32x32xf32>
    %94 = tpu.matmul %25, %93, %cst_60 {dimension_numbers = #tpu.dot_dimension_numbers<[1], [0], [0], [1], [0, 0, 1, 1], [], []>} : vector<32x16xf32>, vector<16x32xf32>, vector<32x32xf32> -> vector<32x32xf32>
    %c0_61 = arith.constant 0 : index
    %c1_62 = arith.constant 1 : index
    %c0_63 = arith.constant 0 : index
    %c0_64 = arith.constant 0 : index
    %95 = vector.load %arg5[%c0_61, %c1_62, %c0_63, %c0_64] : memref<1x8x32x32xf32, #tpu.memory_space<vmem>>, vector<1x1x32x32xf32>
    %96 = vector.shape_cast %95 : vector<1x1x32x32xf32> to vector<32x32xf32>
    %97 = vector.shape_cast %94 : vector<32x32xf32> to vector<1x1x32x32xf32>
    tpu.vector_store %arg5[%c0_61, %c1_62, %c0_63, %c0_64], %97 {strides = array<i32>} : memref<1x8x32x32xf32, #tpu.memory_space<vmem>>, vector<1x1x32x32xf32>,
    %c0_65 = arith.constant 0 : index
    %c0_66 = arith.constant 0 : index
    %c0_67 = arith.constant 0 : index
    %c0_68 = arith.constant 0 : index
    %98 = vector.load %arg2[%c0_65, %c0_66, %c0_67, %c0_68] : memref<1x4x16x16xf32, #tpu.memory_space<vmem>>, vector<1x1x16x16xf32>
    %99 = vector.shape_cast %98 : vector<1x1x16x16xf32> to vector<16x16xf32>
    %c2_69 = arith.constant 2 : index
    %c0_70 = arith.constant 0 : index
    %100 = memref.load %arg3[%c2_69, %c0_70] : memref<8x4xf32, #tpu.memory_space<smem>>
    %101 = vector.broadcast %100 : f32 to vector<16x16xf32>
    %102 = arith.mulf %99, %101 : vector<16x16xf32>
    %c0_71 = arith.constant 0 : index
    %c1_72 = arith.constant 1 : index
    %c0_73 = arith.constant 0 : index
    %c0_74 = arith.constant 0 : index
    %103 = vector.load %arg2[%c0_71, %c1_72, %c0_73, %c0_74] : memref<1x4x16x16xf32, #tpu.memory_space<vmem>>, vector<1x1x16x16xf32>
    %104 = vector.shape_cast %103 : vector<1x1x16x16xf32> to vector<16x16xf32>
    %c2_75 = arith.constant 2 : index
    %c1_76 = arith.constant 1 : index
    %105 = memref.load %arg3[%c2_75, %c1_76] : memref<8x4xf32, #tpu.memory_space<smem>>
    %106 = vector.broadcast %105 : f32 to vector<16x16xf32>
    %107 = arith.mulf %104, %106 : vector<16x16xf32>
    %108 = arith.addf %102, %107 : vector<16x16xf32>
    %c0_77 = arith.constant 0 : index
    %c2_78 = arith.constant 2 : index
    %c0_79 = arith.constant 0 : index
    %c0_80 = arith.constant 0 : index
    %109 = vector.load %arg2[%c0_77, %c2_78, %c0_79, %c0_80] : memref<1x4x16x16xf32, #tpu.memory_space<vmem>>, vector<1x1x16x16xf32>
    %110 = vector.shape_cast %109 : vector<1x1x16x16xf32> to vector<16x16xf32>
    %c2_81 = arith.constant 2 : index
    %c2_82 = arith.constant 2 : index
    %111 = memref.load %arg3[%c2_81, %c2_82] : memref<8x4xf32, #tpu.memory_space<smem>>
    %112 = vector.broadcast %111 : f32 to vector<16x16xf32>
    %113 = arith.mulf %110, %112 : vector<16x16xf32>
    %114 = arith.addf %108, %113 : vector<16x16xf32>
    %c0_83 = arith.constant 0 : index
    %c3_84 = arith.constant 3 : index
    %c0_85 = arith.constant 0 : index
    %c0_86 = arith.constant 0 : index
    %115 = vector.load %arg2[%c0_83, %c3_84, %c0_85, %c0_86] : memref<1x4x16x16xf32, #tpu.memory_space<vmem>>, vector<1x1x16x16xf32>
    %116 = vector.shape_cast %115 : vector<1x1x16x16xf32> to vector<16x16xf32>
    %c2_87 = arith.constant 2 : index
    %c3_88 = arith.constant 3 : index
    %117 = memref.load %arg3[%c2_87, %c3_88] : memref<8x4xf32, #tpu.memory_space<smem>>
    %118 = vector.broadcast %117 : f32 to vector<16x16xf32>
    %119 = arith.mulf %116, %118 : vector<16x16xf32>
    %120 = arith.addf %114, %119 : vector<16x16xf32>
    %c2_89 = arith.constant 2 : index
    %121 = memref.load %arg4[%c2_89] : memref<8xf32, #tpu.memory_space<smem>>
    %122 = vector.broadcast %121 : f32 to vector<16x16xf32>
    %123 = arith.addf %120, %122 : vector<16x16xf32>
    %cst_90 = arith.constant 0.000000e+00 : f32
    %124 = vector.broadcast %cst_90 : f32 to vector<16x16xf32>
    %125 = arith.cmpf ogt, %123, %124 : vector<16x16xf32>
    %cst_91 = arith.constant 1.000000e-01 : f32
    %126 = vector.broadcast %cst_91 : f32 to vector<16x16xf32>
    %127 = arith.mulf %126, %123 : vector<16x16xf32>
    %128 = arith.select %125, %123, %127 : vector<16x16xi1>, vector<16x16xf32>
    %cst_92 = arith.constant dense<0.000000e+00> : vector<16x32xf32>
    %129 = tpu.matmul %128, %12, %cst_92 {dimension_numbers = #tpu.dot_dimension_numbers<[1], [0], [0], [1], [0, 0, 1, 1], [], []>} : vector<16x16xf32>, vector<16x32xf32>, vector<16x32xf32> -> vector<16x32xf32>
    %cst_93 = arith.constant dense<0.000000e+00> : vector<32x32xf32>
    %130 = tpu.matmul %25, %129, %cst_93 {dimension_numbers = #tpu.dot_dimension_numbers<[1], [0], [0], [1], [0, 0, 1, 1], [], []>} : vector<32x16xf32>, vector<16x32xf32>, vector<32x32xf32> -> vector<32x32xf32>
    %c0_94 = arith.constant 0 : index
    %c2_95 = arith.constant 2 : index
    %c0_96 = arith.constant 0 : index
    %c0_97 = arith.constant 0 : index
    %131 = vector.load %arg5[%c0_94, %c2_95, %c0_96, %c0_97] : memref<1x8x32x32xf32, #tpu.memory_space<vmem>>, vector<1x1x32x32xf32>
    %132 = vector.shape_cast %131 : vector<1x1x32x32xf32> to vector<32x32xf32>
    %133 = vector.shape_cast %130 : vector<32x32xf32> to vector<1x1x32x32xf32>
    tpu.vector_store %arg5[%c0_94, %c2_95, %c0_96, %c0_97], %133 {strides = array<i32>} : memref<1x8x32x32xf32, #tpu.memory_space<vmem>>, vector<1x1x32x32xf32>,
    %c0_98 = arith.constant 0 : index
    %c0_99 = arith.constant 0 : index
    %c0_100 = arith.constant 0 : index
    %c0_101 = arith.constant 0 : index
    %134 = vector.load %arg2[%c0_98, %c0_99, %c0_100, %c0_101] : memref<1x4x16x16xf32, #tpu.memory_space<vmem>>, vector<1x1x16x16xf32>
    %135 = vector.shape_cast %134 : vector<1x1x16x16xf32> to vector<16x16xf32>
    %c3_102 = arith.constant 3 : index
    %c0_103 = arith.constant 0 : index
    %136 = memref.load %arg3[%c3_102, %c0_103] : memref<8x4xf32, #tpu.memory_space<smem>>
    %137 = vector.broadcast %136 : f32 to vector<16x16xf32>
    %138 = arith.mulf %135, %137 : vector<16x16xf32>
    %c0_104 = arith.constant 0 : index
    %c1_105 = arith.constant 1 : index
    %c0_106 = arith.constant 0 : index
    %c0_107 = arith.constant 0 : index
    %139 = vector.load %arg2[%c0_104, %c1_105, %c0_106, %c0_107] : memref<1x4x16x16xf32, #tpu.memory_space<vmem>>, vector<1x1x16x16xf32>
    %140 = vector.shape_cast %139 : vector<1x1x16x16xf32> to vector<16x16xf32>
    %c3_108 = arith.constant 3 : index
    %c1_109 = arith.constant 1 : index
    %141 = memref.load %arg3[%c3_108, %c1_109] : memref<8x4xf32, #tpu.memory_space<smem>>
    %142 = vector.broadcast %141 : f32 to vector<16x16xf32>
    %143 = arith.mulf %140, %142 : vector<16x16xf32>
    %144 = arith.addf %138, %143 : vector<16x16xf32>
    %c0_110 = arith.constant 0 : index
    %c2_111 = arith.constant 2 : index
    %c0_112 = arith.constant 0 : index
    %c0_113 = arith.constant 0 : index
    %145 = vector.load %arg2[%c0_110, %c2_111, %c0_112, %c0_113] : memref<1x4x16x16xf32, #tpu.memory_space<vmem>>, vector<1x1x16x16xf32>
    %146 = vector.shape_cast %145 : vector<1x1x16x16xf32> to vector<16x16xf32>
    %c3_114 = arith.constant 3 : index
    %c2_115 = arith.constant 2 : index
    %147 = memref.load %arg3[%c3_114, %c2_115] : memref<8x4xf32, #tpu.memory_space<smem>>
    %148 = vector.broadcast %147 : f32 to vector<16x16xf32>
    %149 = arith.mulf %146, %148 : vector<16x16xf32>
    %150 = arith.addf %144, %149 : vector<16x16xf32>
    %c0_116 = arith.constant 0 : index
    %c3_117 = arith.constant 3 : index
    %c0_118 = arith.constant 0 : index
    %c0_119 = arith.constant 0 : index
    %151 = vector.load %arg2[%c0_116, %c3_117, %c0_118, %c0_119] : memref<1x4x16x16xf32, #tpu.memory_space<vmem>>, vector<1x1x16x16xf32>
    %152 = vector.shape_cast %151 : vector<1x1x16x16xf32> to vector<16x16xf32>
    %c3_120 = arith.constant 3 : index
    %c3_121 = arith.constant 3 : index
    %153 = memref.load %arg3[%c3_120, %c3_121] : memref<8x4xf32, #tpu.memory_space<smem>>
    %154 = vector.broadcast %153 : f32 to vector<16x16xf32>
    %155 = arith.mulf %152, %154 : vector<16x16xf32>
    %156 = arith.addf %150, %155 : vector<16x16xf32>
    %c3_122 = arith.constant 3 : index
    %157 = memref.load %arg4[%c3_122] : memref<8xf32, #tpu.memory_space<smem>>
    %158 = vector.broadcast %157 : f32 to vector<16x16xf32>
    %159 = arith.addf %156, %158 : vector<16x16xf32>
    %cst_123 = arith.constant 0.000000e+00 : f32
    %160 = vector.broadcast %cst_123 : f32 to vector<16x16xf32>
    %161 = arith.cmpf ogt, %159, %160 : vector<16x16xf32>
    %cst_124 = arith.constant 1.000000e-01 : f32
    %162 = vector.broadcast %cst_124 : f32 to vector<16x16xf32>
    %163 = arith.mulf %162, %159 : vector<16x16xf32>
    %164 = arith.select %161, %159, %163 : vector<16x16xi1>, vector<16x16xf32>
    %cst_125 = arith.constant dense<0.000000e+00> : vector<16x32xf32>
    %165 = tpu.matmul %164, %12, %cst_125 {dimension_numbers = #tpu.dot_dimension_numbers<[1], [0], [0], [1], [0, 0, 1, 1], [], []>} : vector<16x16xf32>, vector<16x32xf32>, vector<16x32xf32> -> vector<16x32xf32>
    %cst_126 = arith.constant dense<0.000000e+00> : vector<32x32xf32>
    %166 = tpu.matmul %25, %165, %cst_126 {dimension_numbers = #tpu.dot_dimension_numbers<[1], [0], [0], [1], [0, 0, 1, 1], [], []>} : vector<32x16xf32>, vector<16x32xf32>, vector<32x32xf32> -> vector<32x32xf32>
    %c0_127 = arith.constant 0 : index
    %c3_128 = arith.constant 3 : index
    %c0_129 = arith.constant 0 : index
    %c0_130 = arith.constant 0 : index
    %167 = vector.load %arg5[%c0_127, %c3_128, %c0_129, %c0_130] : memref<1x8x32x32xf32, #tpu.memory_space<vmem>>, vector<1x1x32x32xf32>
    %168 = vector.shape_cast %167 : vector<1x1x32x32xf32> to vector<32x32xf32>
    %169 = vector.shape_cast %166 : vector<32x32xf32> to vector<1x1x32x32xf32>
    tpu.vector_store %arg5[%c0_127, %c3_128, %c0_129, %c0_130], %169 {strides = array<i32>} : memref<1x8x32x32xf32, #tpu.memory_space<vmem>>, vector<1x1x32x32xf32>,
    %c0_131 = arith.constant 0 : index
    %c0_132 = arith.constant 0 : index
    %c0_133 = arith.constant 0 : index
    %c0_134 = arith.constant 0 : index
    %170 = vector.load %arg2[%c0_131, %c0_132, %c0_133, %c0_134] : memref<1x4x16x16xf32, #tpu.memory_space<vmem>>, vector<1x1x16x16xf32>
    %171 = vector.shape_cast %170 : vector<1x1x16x16xf32> to vector<16x16xf32>
    %c4 = arith.constant 4 : index
    %c0_135 = arith.constant 0 : index
    %172 = memref.load %arg3[%c4, %c0_135] : memref<8x4xf32, #tpu.memory_space<smem>>
    %173 = vector.broadcast %172 : f32 to vector<16x16xf32>
    %174 = arith.mulf %171, %173 : vector<16x16xf32>
    %c0_136 = arith.constant 0 : index
    %c1_137 = arith.constant 1 : index
    %c0_138 = arith.constant 0 : index
    %c0_139 = arith.constant 0 : index
    %175 = vector.load %arg2[%c0_136, %c1_137, %c0_138, %c0_139] : memref<1x4x16x16xf32, #tpu.memory_space<vmem>>, vector<1x1x16x16xf32>
    %176 = vector.shape_cast %175 : vector<1x1x16x16xf32> to vector<16x16xf32>
    %c4_140 = arith.constant 4 : index
    %c1_141 = arith.constant 1 : index
    %177 = memref.load %arg3[%c4_140, %c1_141] : memref<8x4xf32, #tpu.memory_space<smem>>
    %178 = vector.broadcast %177 : f32 to vector<16x16xf32>
    %179 = arith.mulf %176, %178 : vector<16x16xf32>
    %180 = arith.addf %174, %179 : vector<16x16xf32>
    %c0_142 = arith.constant 0 : index
    %c2_143 = arith.constant 2 : index
    %c0_144 = arith.constant 0 : index
    %c0_145 = arith.constant 0 : index
    %181 = vector.load %arg2[%c0_142, %c2_143, %c0_144, %c0_145] : memref<1x4x16x16xf32, #tpu.memory_space<vmem>>, vector<1x1x16x16xf32>
    %182 = vector.shape_cast %181 : vector<1x1x16x16xf32> to vector<16x16xf32>
    %c4_146 = arith.constant 4 : index
    %c2_147 = arith.constant 2 : index
    %183 = memref.load %arg3[%c4_146, %c2_147] : memref<8x4xf32, #tpu.memory_space<smem>>
    %184 = vector.broadcast %183 : f32 to vector<16x16xf32>
    %185 = arith.mulf %182, %184 : vector<16x16xf32>
    %186 = arith.addf %180, %185 : vector<16x16xf32>
    %c0_148 = arith.constant 0 : index
    %c3_149 = arith.constant 3 : index
    %c0_150 = arith.constant 0 : index
    %c0_151 = arith.constant 0 : index
    %187 = vector.load %arg2[%c0_148, %c3_149, %c0_150, %c0_151] : memref<1x4x16x16xf32, #tpu.memory_space<vmem>>, vector<1x1x16x16xf32>
    %188 = vector.shape_cast %187 : vector<1x1x16x16xf32> to vector<16x16xf32>
    %c4_152 = arith.constant 4 : index
    %c3_153 = arith.constant 3 : index
    %189 = memref.load %arg3[%c4_152, %c3_153] : memref<8x4xf32, #tpu.memory_space<smem>>
    %190 = vector.broadcast %189 : f32 to vector<16x16xf32>
    %191 = arith.mulf %188, %190 : vector<16x16xf32>
    %192 = arith.addf %186, %191 : vector<16x16xf32>
    %c4_154 = arith.constant 4 : index
    %193 = memref.load %arg4[%c4_154] : memref<8xf32, #tpu.memory_space<smem>>
    %194 = vector.broadcast %193 : f32 to vector<16x16xf32>
    %195 = arith.addf %192, %194 : vector<16x16xf32>
    %cst_155 = arith.constant 0.000000e+00 : f32
    %196 = vector.broadcast %cst_155 : f32 to vector<16x16xf32>
    %197 = arith.cmpf ogt, %195, %196 : vector<16x16xf32>
    %cst_156 = arith.constant 1.000000e-01 : f32
    %198 = vector.broadcast %cst_156 : f32 to vector<16x16xf32>
    %199 = arith.mulf %198, %195 : vector<16x16xf32>
    %200 = arith.select %197, %195, %199 : vector<16x16xi1>, vector<16x16xf32>
    %cst_157 = arith.constant dense<0.000000e+00> : vector<16x32xf32>
    %201 = tpu.matmul %200, %12, %cst_157 {dimension_numbers = #tpu.dot_dimension_numbers<[1], [0], [0], [1], [0, 0, 1, 1], [], []>} : vector<16x16xf32>, vector<16x32xf32>, vector<16x32xf32> -> vector<16x32xf32>
    %cst_158 = arith.constant dense<0.000000e+00> : vector<32x32xf32>
    %202 = tpu.matmul %25, %201, %cst_158 {dimension_numbers = #tpu.dot_dimension_numbers<[1], [0], [0], [1], [0, 0, 1, 1], [], []>} : vector<32x16xf32>, vector<16x32xf32>, vector<32x32xf32> -> vector<32x32xf32>
    %c0_159 = arith.constant 0 : index
    %c4_160 = arith.constant 4 : index
    %c0_161 = arith.constant 0 : index
    %c0_162 = arith.constant 0 : index
    %203 = vector.load %arg5[%c0_159, %c4_160, %c0_161, %c0_162] : memref<1x8x32x32xf32, #tpu.memory_space<vmem>>, vector<1x1x32x32xf32>
    %204 = vector.shape_cast %203 : vector<1x1x32x32xf32> to vector<32x32xf32>
    %205 = vector.shape_cast %202 : vector<32x32xf32> to vector<1x1x32x32xf32>
    tpu.vector_store %arg5[%c0_159, %c4_160, %c0_161, %c0_162], %205 {strides = array<i32>} : memref<1x8x32x32xf32, #tpu.memory_space<vmem>>, vector<1x1x32x32xf32>,
    %c0_163 = arith.constant 0 : index
    %c0_164 = arith.constant 0 : index
    %c0_165 = arith.constant 0 : index
    %c0_166 = arith.constant 0 : index
    %206 = vector.load %arg2[%c0_163, %c0_164, %c0_165, %c0_166] : memref<1x4x16x16xf32, #tpu.memory_space<vmem>>, vector<1x1x16x16xf32>
    %207 = vector.shape_cast %206 : vector<1x1x16x16xf32> to vector<16x16xf32>
    %c5 = arith.constant 5 : index
    %c0_167 = arith.constant 0 : index
    %208 = memref.load %arg3[%c5, %c0_167] : memref<8x4xf32, #tpu.memory_space<smem>>
    %209 = vector.broadcast %208 : f32 to vector<16x16xf32>
    %210 = arith.mulf %207, %209 : vector<16x16xf32>
    %c0_168 = arith.constant 0 : index
    %c1_169 = arith.constant 1 : index
    %c0_170 = arith.constant 0 : index
    %c0_171 = arith.constant 0 : index
    %211 = vector.load %arg2[%c0_168, %c1_169, %c0_170, %c0_171] : memref<1x4x16x16xf32, #tpu.memory_space<vmem>>, vector<1x1x16x16xf32>
    %212 = vector.shape_cast %211 : vector<1x1x16x16xf32> to vector<16x16xf32>
    %c5_172 = arith.constant 5 : index
    %c1_173 = arith.constant 1 : index
    %213 = memref.load %arg3[%c5_172, %c1_173] : memref<8x4xf32, #tpu.memory_space<smem>>
    %214 = vector.broadcast %213 : f32 to vector<16x16xf32>
    %215 = arith.mulf %212, %214 : vector<16x16xf32>
    %216 = arith.addf %210, %215 : vector<16x16xf32>
    %c0_174 = arith.constant 0 : index
    %c2_175 = arith.constant 2 : index
    %c0_176 = arith.constant 0 : index
    %c0_177 = arith.constant 0 : index
    %217 = vector.load %arg2[%c0_174, %c2_175, %c0_176, %c0_177] : memref<1x4x16x16xf32, #tpu.memory_space<vmem>>, vector<1x1x16x16xf32>
    %218 = vector.shape_cast %217 : vector<1x1x16x16xf32> to vector<16x16xf32>
    %c5_178 = arith.constant 5 : index
    %c2_179 = arith.constant 2 : index
    %219 = memref.load %arg3[%c5_178, %c2_179] : memref<8x4xf32, #tpu.memory_space<smem>>
    %220 = vector.broadcast %219 : f32 to vector<16x16xf32>
    %221 = arith.mulf %218, %220 : vector<16x16xf32>
    %222 = arith.addf %216, %221 : vector<16x16xf32>
    %c0_180 = arith.constant 0 : index
    %c3_181 = arith.constant 3 : index
    %c0_182 = arith.constant 0 : index
    %c0_183 = arith.constant 0 : index
    %223 = vector.load %arg2[%c0_180, %c3_181, %c0_182, %c0_183] : memref<1x4x16x16xf32, #tpu.memory_space<vmem>>, vector<1x1x16x16xf32>
    %224 = vector.shape_cast %223 : vector<1x1x16x16xf32> to vector<16x16xf32>
    %c5_184 = arith.constant 5 : index
    %c3_185 = arith.constant 3 : index
    %225 = memref.load %arg3[%c5_184, %c3_185] : memref<8x4xf32, #tpu.memory_space<smem>>
    %226 = vector.broadcast %225 : f32 to vector<16x16xf32>
    %227 = arith.mulf %224, %226 : vector<16x16xf32>
    %228 = arith.addf %222, %227 : vector<16x16xf32>
    %c5_186 = arith.constant 5 : index
    %229 = memref.load %arg4[%c5_186] : memref<8xf32, #tpu.memory_space<smem>>
    %230 = vector.broadcast %229 : f32 to vector<16x16xf32>
    %231 = arith.addf %228, %230 : vector<16x16xf32>
    %cst_187 = arith.constant 0.000000e+00 : f32
    %232 = vector.broadcast %cst_187 : f32 to vector<16x16xf32>
    %233 = arith.cmpf ogt, %231, %232 : vector<16x16xf32>
    %cst_188 = arith.constant 1.000000e-01 : f32
    %234 = vector.broadcast %cst_188 : f32 to vector<16x16xf32>
    %235 = arith.mulf %234, %231 : vector<16x16xf32>
    %236 = arith.select %233, %231, %235 : vector<16x16xi1>, vector<16x16xf32>
    %cst_189 = arith.constant dense<0.000000e+00> : vector<16x32xf32>
    %237 = tpu.matmul %236, %12, %cst_189 {dimension_numbers = #tpu.dot_dimension_numbers<[1], [0], [0], [1], [0, 0, 1, 1], [], []>} : vector<16x16xf32>, vector<16x32xf32>, vector<16x32xf32> -> vector<16x32xf32>
    %cst_190 = arith.constant dense<0.000000e+00> : vector<32x32xf32>
    %238 = tpu.matmul %25, %237, %cst_190 {dimension_numbers = #tpu.dot_dimension_numbers<[1], [0], [0], [1], [0, 0, 1, 1], [], []>} : vector<32x16xf32>, vector<16x32xf32>, vector<32x32xf32> -> vector<32x32xf32>
    %c0_191 = arith.constant 0 : index
    %c5_192 = arith.constant 5 : index
    %c0_193 = arith.constant 0 : index
    %c0_194 = arith.constant 0 : index
    %239 = vector.load %arg5[%c0_191, %c5_192, %c0_193, %c0_194] : memref<1x8x32x32xf32, #tpu.memory_space<vmem>>, vector<1x1x32x32xf32>
    %240 = vector.shape_cast %239 : vector<1x1x32x32xf32> to vector<32x32xf32>
    %241 = vector.shape_cast %238 : vector<32x32xf32> to vector<1x1x32x32xf32>
    tpu.vector_store %arg5[%c0_191, %c5_192, %c0_193, %c0_194], %241 {strides = array<i32>} : memref<1x8x32x32xf32, #tpu.memory_space<vmem>>, vector<1x1x32x32xf32>,
    %c0_195 = arith.constant 0 : index
    %c0_196 = arith.constant 0 : index
    %c0_197 = arith.constant 0 : index
    %c0_198 = arith.constant 0 : index
    %242 = vector.load %arg2[%c0_195, %c0_196, %c0_197, %c0_198] : memref<1x4x16x16xf32, #tpu.memory_space<vmem>>, vector<1x1x16x16xf32>
    %243 = vector.shape_cast %242 : vector<1x1x16x16xf32> to vector<16x16xf32>
    %c6 = arith.constant 6 : index
    %c0_199 = arith.constant 0 : index
    %244 = memref.load %arg3[%c6, %c0_199] : memref<8x4xf32, #tpu.memory_space<smem>>
    %245 = vector.broadcast %244 : f32 to vector<16x16xf32>
    %246 = arith.mulf %243, %245 : vector<16x16xf32>
    %c0_200 = arith.constant 0 : index
    %c1_201 = arith.constant 1 : index
    %c0_202 = arith.constant 0 : index
    %c0_203 = arith.constant 0 : index
    %247 = vector.load %arg2[%c0_200, %c1_201, %c0_202, %c0_203] : memref<1x4x16x16xf32, #tpu.memory_space<vmem>>, vector<1x1x16x16xf32>
    %248 = vector.shape_cast %247 : vector<1x1x16x16xf32> to vector<16x16xf32>
    %c6_204 = arith.constant 6 : index
    %c1_205 = arith.constant 1 : index
    %249 = memref.load %arg3[%c6_204, %c1_205] : memref<8x4xf32, #tpu.memory_space<smem>>
    %250 = vector.broadcast %249 : f32 to vector<16x16xf32>
    %251 = arith.mulf %248, %250 : vector<16x16xf32>
    %252 = arith.addf %246, %251 : vector<16x16xf32>
    %c0_206 = arith.constant 0 : index
    %c2_207 = arith.constant 2 : index
    %c0_208 = arith.constant 0 : index
    %c0_209 = arith.constant 0 : index
    %253 = vector.load %arg2[%c0_206, %c2_207, %c0_208, %c0_209] : memref<1x4x16x16xf32, #tpu.memory_space<vmem>>, vector<1x1x16x16xf32>
    %254 = vector.shape_cast %253 : vector<1x1x16x16xf32> to vector<16x16xf32>
    %c6_210 = arith.constant 6 : index
    %c2_211 = arith.constant 2 : index
    %255 = memref.load %arg3[%c6_210, %c2_211] : memref<8x4xf32, #tpu.memory_space<smem>>
    %256 = vector.broadcast %255 : f32 to vector<16x16xf32>
    %257 = arith.mulf %254, %256 : vector<16x16xf32>
    %258 = arith.addf %252, %257 : vector<16x16xf32>
    %c0_212 = arith.constant 0 : index
    %c3_213 = arith.constant 3 : index
    %c0_214 = arith.constant 0 : index
    %c0_215 = arith.constant 0 : index
    %259 = vector.load %arg2[%c0_212, %c3_213, %c0_214, %c0_215] : memref<1x4x16x16xf32, #tpu.memory_space<vmem>>, vector<1x1x16x16xf32>
    %260 = vector.shape_cast %259 : vector<1x1x16x16xf32> to vector<16x16xf32>
    %c6_216 = arith.constant 6 : index
    %c3_217 = arith.constant 3 : index
    %261 = memref.load %arg3[%c6_216, %c3_217] : memref<8x4xf32, #tpu.memory_space<smem>>
    %262 = vector.broadcast %261 : f32 to vector<16x16xf32>
    %263 = arith.mulf %260, %262 : vector<16x16xf32>
    %264 = arith.addf %258, %263 : vector<16x16xf32>
    %c6_218 = arith.constant 6 : index
    %265 = memref.load %arg4[%c6_218] : memref<8xf32, #tpu.memory_space<smem>>
    %266 = vector.broadcast %265 : f32 to vector<16x16xf32>
    %267 = arith.addf %264, %266 : vector<16x16xf32>
    %cst_219 = arith.constant 0.000000e+00 : f32
    %268 = vector.broadcast %cst_219 : f32 to vector<16x16xf32>
    %269 = arith.cmpf ogt, %267, %268 : vector<16x16xf32>
    %cst_220 = arith.constant 1.000000e-01 : f32
    %270 = vector.broadcast %cst_220 : f32 to vector<16x16xf32>
    %271 = arith.mulf %270, %267 : vector<16x16xf32>
    %272 = arith.select %269, %267, %271 : vector<16x16xi1>, vector<16x16xf32>
    %cst_221 = arith.constant dense<0.000000e+00> : vector<16x32xf32>
    %273 = tpu.matmul %272, %12, %cst_221 {dimension_numbers = #tpu.dot_dimension_numbers<[1], [0], [0], [1], [0, 0, 1, 1], [], []>} : vector<16x16xf32>, vector<16x32xf32>, vector<16x32xf32> -> vector<16x32xf32>
    %cst_222 = arith.constant dense<0.000000e+00> : vector<32x32xf32>
    %274 = tpu.matmul %25, %273, %cst_222 {dimension_numbers = #tpu.dot_dimension_numbers<[1], [0], [0], [1], [0, 0, 1, 1], [], []>} : vector<32x16xf32>, vector<16x32xf32>, vector<32x32xf32> -> vector<32x32xf32>
    %c0_223 = arith.constant 0 : index
    %c6_224 = arith.constant 6 : index
    %c0_225 = arith.constant 0 : index
    %c0_226 = arith.constant 0 : index
    %275 = vector.load %arg5[%c0_223, %c6_224, %c0_225, %c0_226] : memref<1x8x32x32xf32, #tpu.memory_space<vmem>>, vector<1x1x32x32xf32>
    %276 = vector.shape_cast %275 : vector<1x1x32x32xf32> to vector<32x32xf32>
    %277 = vector.shape_cast %274 : vector<32x32xf32> to vector<1x1x32x32xf32>
    tpu.vector_store %arg5[%c0_223, %c6_224, %c0_225, %c0_226], %277 {strides = array<i32>} : memref<1x8x32x32xf32, #tpu.memory_space<vmem>>, vector<1x1x32x32xf32>,
    %c0_227 = arith.constant 0 : index
    %c0_228 = arith.constant 0 : index
    %c0_229 = arith.constant 0 : index
    %c0_230 = arith.constant 0 : index
    %278 = vector.load %arg2[%c0_227, %c0_228, %c0_229, %c0_230] : memref<1x4x16x16xf32, #tpu.memory_space<vmem>>, vector<1x1x16x16xf32>
    %279 = vector.shape_cast %278 : vector<1x1x16x16xf32> to vector<16x16xf32>
    %c7 = arith.constant 7 : index
    %c0_231 = arith.constant 0 : index
    %280 = memref.load %arg3[%c7, %c0_231] : memref<8x4xf32, #tpu.memory_space<smem>>
    %281 = vector.broadcast %280 : f32 to vector<16x16xf32>
    %282 = arith.mulf %279, %281 : vector<16x16xf32>
    %c0_232 = arith.constant 0 : index
    %c1_233 = arith.constant 1 : index
    %c0_234 = arith.constant 0 : index
    %c0_235 = arith.constant 0 : index
    %283 = vector.load %arg2[%c0_232, %c1_233, %c0_234, %c0_235] : memref<1x4x16x16xf32, #tpu.memory_space<vmem>>, vector<1x1x16x16xf32>
    %284 = vector.shape_cast %283 : vector<1x1x16x16xf32> to vector<16x16xf32>
    %c7_236 = arith.constant 7 : index
    %c1_237 = arith.constant 1 : index
    %285 = memref.load %arg3[%c7_236, %c1_237] : memref<8x4xf32, #tpu.memory_space<smem>>
    %286 = vector.broadcast %285 : f32 to vector<16x16xf32>
    %287 = arith.mulf %284, %286 : vector<16x16xf32>
    %288 = arith.addf %282, %287 : vector<16x16xf32>
    %c0_238 = arith.constant 0 : index
    %c2_239 = arith.constant 2 : index
    %c0_240 = arith.constant 0 : index
    %c0_241 = arith.constant 0 : index
    %289 = vector.load %arg2[%c0_238, %c2_239, %c0_240, %c0_241] : memref<1x4x16x16xf32, #tpu.memory_space<vmem>>, vector<1x1x16x16xf32>
    %290 = vector.shape_cast %289 : vector<1x1x16x16xf32> to vector<16x16xf32>
    %c7_242 = arith.constant 7 : index
    %c2_243 = arith.constant 2 : index
    %291 = memref.load %arg3[%c7_242, %c2_243] : memref<8x4xf32, #tpu.memory_space<smem>>
    %292 = vector.broadcast %291 : f32 to vector<16x16xf32>
    %293 = arith.mulf %290, %292 : vector<16x16xf32>
    %294 = arith.addf %288, %293 : vector<16x16xf32>
    %c0_244 = arith.constant 0 : index
    %c3_245 = arith.constant 3 : index
    %c0_246 = arith.constant 0 : index
    %c0_247 = arith.constant 0 : index
    %295 = vector.load %arg2[%c0_244, %c3_245, %c0_246, %c0_247] : memref<1x4x16x16xf32, #tpu.memory_space<vmem>>, vector<1x1x16x16xf32>
    %296 = vector.shape_cast %295 : vector<1x1x16x16xf32> to vector<16x16xf32>
    %c7_248 = arith.constant 7 : index
    %c3_249 = arith.constant 3 : index
    %297 = memref.load %arg3[%c7_248, %c3_249] : memref<8x4xf32, #tpu.memory_space<smem>>
    %298 = vector.broadcast %297 : f32 to vector<16x16xf32>
    %299 = arith.mulf %296, %298 : vector<16x16xf32>
    %300 = arith.addf %294, %299 : vector<16x16xf32>
    %c7_250 = arith.constant 7 : index
    %301 = memref.load %arg4[%c7_250] : memref<8xf32, #tpu.memory_space<smem>>
    %302 = vector.broadcast %301 : f32 to vector<16x16xf32>
    %303 = arith.addf %300, %302 : vector<16x16xf32>
    %cst_251 = arith.constant 0.000000e+00 : f32
    %304 = vector.broadcast %cst_251 : f32 to vector<16x16xf32>
    %305 = arith.cmpf ogt, %303, %304 : vector<16x16xf32>
    %cst_252 = arith.constant 1.000000e-01 : f32
    %306 = vector.broadcast %cst_252 : f32 to vector<16x16xf32>
    %307 = arith.mulf %306, %303 : vector<16x16xf32>
    %308 = arith.select %305, %303, %307 : vector<16x16xi1>, vector<16x16xf32>
    %cst_253 = arith.constant dense<0.000000e+00> : vector<16x32xf32>
    %309 = tpu.matmul %308, %12, %cst_253 {dimension_numbers = #tpu.dot_dimension_numbers<[1], [0], [0], [1], [0, 0, 1, 1], [], []>} : vector<16x16xf32>, vector<16x32xf32>, vector<16x32xf32> -> vector<16x32xf32>
    %cst_254 = arith.constant dense<0.000000e+00> : vector<32x32xf32>
    %310 = tpu.matmul %25, %309, %cst_254 {dimension_numbers = #tpu.dot_dimension_numbers<[1], [0], [0], [1], [0, 0, 1, 1], [], []>} : vector<32x16xf32>, vector<16x32xf32>, vector<32x32xf32> -> vector<32x32xf32>
    %c0_255 = arith.constant 0 : index
    %c7_256 = arith.constant 7 : index
    %c0_257 = arith.constant 0 : index
    %c0_258 = arith.constant 0 : index
    %311 = vector.load %arg5[%c0_255, %c7_256, %c0_257, %c0_258] : memref<1x8x32x32xf32, #tpu.memory_space<vmem>>, vector<1x1x32x32xf32>
    %312 = vector.shape_cast %311 : vector<1x1x32x32xf32> to vector<32x32xf32>
    %313 = vector.shape_cast %310 : vector<32x32xf32> to vector<1x1x32x32xf32>
    tpu.vector_store %arg5[%c0_255, %c7_256, %c0_257, %c0_258], %313 {strides = array<i32>} : memref<1x8x32x32xf32, #tpu.memory_space<vmem>>, vector<1x1x32x32xf32>,
    return
  }
  func.func @transform_0(%arg0: i32, %arg1: i32) -> (i32, i32, i32, i32) {
    %c0_i32 = arith.constant 0 : i32
    %c0_i32_0 = arith.constant 0 : i32
    %c0_i32_1 = arith.constant 0 : i32
    return %arg0, %c0_i32, %arg1, %c0_i32_0 : i32, i32, i32, i32
  }
  func.func @transform_1(%arg0: i32, %arg1: i32) -> (i32, i32) {
    %c0_i32 = arith.constant 0 : i32
    %c0_i32_0 = arith.constant 0 : i32
    %c0_i32_1 = arith.constant 0 : i32
    return %c0_i32, %c0_i32_0 : i32, i32
  }
  func.func @transform_2(%arg0: i32, %arg1: i32) -> i32 {
    %c0_i32 = arith.constant 0 : i32
    %c0_i32_0 = arith.constant 0 : i32
    return %c0_i32 : i32
  }
  func.func @transform_3(%arg0: i32, %arg1: i32) -> (i32, i32, i32, i32) {
    %c0_i32 = arith.constant 0 : i32
    %c0_i32_0 = arith.constant 0 : i32
    %c0_i32_1 = arith.constant 0 : i32
    return %arg0, %c0_i32, %arg1, %c0_i32_0 : i32, i32, i32, i32
  }
}

</mosaic_0001>

<bundles_post_ra>
// kernel: tpu_custom_call.1
= control target key start
LH: loop header
LB: loop body
LE: loop exit
PB: predicated region body
PF: predicated region fallthrough
CT: control target
= control target key end

     0   :  { %s2310_s0 = inlined_call_operand.hbm [shape: f32[2,4,16,16], index: 0, kind: input, shape index: {}]   ;;  %s2311_s1 = inlined_call_operand.vmem [shape: f32[8,4], index: 1, kind: input, shape index: {}]   ;;  %s2312_s2 = inlined_call_operand.vmem [shape: f32[8], index: 2, kind: input, shape index: {}]   ;;  %s2313_s3 = inlined_call_operand.hbm [shape: f32[2,8,32,32], index: 3, kind: output, shape index: {}]  }
   0x1   :  { %2314 = sst [smem:[#allocation14_spill]] %s2311_s1 }
   0x2   :  { %8 = vsyncpa [#allocation3], 0 }
   0x3   :  { %10 = vsyncpa [#allocation3 + $0x1], 0 }
   0x4   :  { %11 = vsyncpa [#allocation5], 0 }
   0x5   :  { %12 = vsyncpa [#allocation8], 0 }
   0x6   :  { %13 = vsyncpa [#allocation4], 0 }
   0x7   :  { %15 = vsyncpa [#allocation4 + $0x1], 0  ;;  %s1724_s12 = smov 0   ;;  %s1726_s13 = smov 0  }
   0x8   :  { %s1728_s14 = smov 0   ;;  %s1730_s15 = smov 0  }
   0x9   :  { %s1732_s16 = smov 0   ;;  %s1734_s17 = smov 0  }
   0xa LB: > { %s1248_s18 = sadd.s32 4294967295, %s1694_s17   ;;  %s1249_s19 = sadd.s32 4294967294, %s1694_s17   ;;  %s1694_s17 = sphi %s1734_s17, %s21_s17   ;;  %s1690_s16 = sphi %s1732_s16, %s2337_s16   ;;  %s1686_s15 = sphi %s1730_s15, %s2336_s15   ;;  %s1682_s14 = sphi %s1728_s14, %s2335_s14   ;;  %s1678_s13 = sphi %s1726_s13, %s2334_s13   ;;  %s1674_s12 = sphi %s1724_s12, %s2333_s12  }
   0xb   : > { %s42_s20 = sadd.s32 1, %s1682_s14  ;;  %p49_p0 = scmp.ne.s32.totalorder %s1682_s14, %s1678_s13 }
   0xc   : > { %p50_p1 = scmp.eq.s32.totalorder %s1694_s17, 0  ;;  %p55_p2 = scmp.ne.s32.totalorder %s1678_s13, %s1674_s12 }
   0xd   : > { %p1762_p3 = scmp.eq.s32.totalorder %s1248_s18, 0  ;;  %p123_p4 = scmp.eq.s32.totalorder %s1248_s18, 1 }
   0xe   : > { %p1766_p5 = por %p50_p1, %p49_p0  ;;  %p129_p6 = scmp.eq.s32.totalorder %s1249_s19, 1 }
   0xf   : > { %p1772_p7 = por %p1762_p3, %p55_p2  ;;  %p1776_p8 = por %p123_p4, %p49_p0 }
  0x10   : > { %p1780_p9 = por %p129_p6, %p55_p2  ;;  %p1250_p10 = scmp.ge.s32.totalorder %s1694_s17, 1 }
  0x11   : > { %p136_p11 = scmp.lt.s32.totalorder %s1694_s17, 3  ;;  %s2320_s1 = sld [smem:[#allocation14_spill]] }
  0x12   : > { %p1253_p13 = scmp.ge.s32.totalorder %s1694_s17, 2  ;;  %p1484_p0 = scmp.lt.s32.totalorder %s1694_s17, 2 }
  0x13   : > { %p1789_p12 = pnand %p1250_p10, %p136_p11  ;;  %s158_s5 = sshll.u32 %s2312_s2, 4  ;;  %s159_s5 = int_to_ptr.vmem [resolvable:$true] %s158_s5 }
  0x14   : > { %p1802_p2 = pnand %p1484_p0, %p1766_p5  ;;  %s1696_s7 = smov [#allocation6]  }
  0x15   : > { %p1467_p1 = pneg %p1789_p12  ;;  %s1697_s8 = smov [#allocation7]  }
  0x16   : > { %s33_s9 = sadd.s32 1, %s1690_s16  ;;  %s169_s10 = sand.u32 1, %s1682_s14  }
  0x17   : > { %s148_s28 = sshll.u32 %s2320_s1, 4  ;;  %p1468_p4 = pnand %p1467_p1, %p1762_p3  ;;  %s149_s28 = int_to_ptr.vmem [resolvable:$true] %s148_s28 }
  0x18   : > { %p35_p6 = scmp.ge.s32.totalorder %s33_s9, 2  ;;  %s1254_s11 = sshll.u32 %s169_s10, 6 }
  0x19   : > { %1470 = dma.vmem_to_smem (!%p1468_p4), %s149_s28, 128, %s1696_s7, [#allocation5]  }
  0x1a   : > { %1473 = dma.vmem_to_smem (!%p1468_p4), %s159_s5, 16, %s1697_s8, [#allocation8]  }
  0x1b   : > { %s1451_s18 = sshll.u32 %s1690_s16, 6  ;;  %s2339_s9 = smov (%p35_p6, %s33_s9), 0 }
  0x1c   : > { %s180_s26 = scalar_lea.hbm %s2310_s0, %s1451_s18  ;;  %s37_s27 = ssub.s32 %s1690_s16, %s2339_s9 }
  0x1d   : > { %s181_s30 = sshll.u32 %s180_s26, 4  ;;  %p40_p5 = scmp.eq.s32.totalorder %s37_s27, 0  ;;  %s182_s30 = int_to_ptr.hbm [resolvable:$true] %s181_s30 }
  0x1e   : > { %s173_s28 = scalar_lea.vmem [#allocation2], %s1254_s11  ;;  %s170_s7 = scalar_lea.sflag [#allocation3], %s169_s10 }
  0x1f   : > { %s183_s4 = sshll.u32 %s173_s28, 4  ;;  %s1698_s8 = smov 128   ;;  %s184_s4 = int_to_ptr.vmem [resolvable:$true] %s183_s4 }
  0x20   : > { %s1821_s5 = scalar_select %p40_p5, %s1682_s14, %s42_s20  }
  0x21   : > { %s1699_s1 = smov 8   ;;  %195 = sbr.rel (%p1789_p12) target bundleno = 718 (0x2ce), region = 32 }
  0x22   : > { %1477 = dma.hbm_to_vmem [thread:$0]  (!%p1802_p2), %s182_s30, 1024, %s184_s4, %s170_s7, %s1698_s8, %s1698_s8, %s1699_s1  }
  0x23   : > { %s1828_s18 = sand.u32 (!%p1789_p12), 1, %s1678_s13  }
  0x24   : > { %s1258_s11 = sshll.u32 (!%p1789_p12), %s1828_s18, 6  ;;  %s198_s19 = scalar_lea.sflag (!%p1789_p12), [#allocation3], %s1828_s18 }
  0x25   : > { %s1832_s22 = scalar_lea.vmem (!%p1789_p12), [#allocation2], %s1258_s11 }
  0x26   : > { %1657 = dma.done.wait (%p1772_p7), %s198_s19, 1024  }
  0x27   : > { %1659 = vsyncadd (%p1772_p7), %s198_s19, 4294966272 }
  0x28   : > { %1661 = dma.done.wait (%p1762_p3), [#allocation5], 128  }
  0x29   : > { %1663 = vsyncadd (%p1762_p3), [#allocation5], 4294967168 }
  0x2a   : > { %1665 = dma.done.wait (%p1762_p3), [#allocation8], 16  }
  0x2b   : > { %1667 = vsyncadd (%p1762_p3), [#allocation8], 4294967280 }
  0x2c   : > { %217 = sfence }
  0x2d   : > { %v238_v0 = vlaneseq  ;;  %s283_s1 = sld [smem:[#allocation6]]  ;;  %v1853_v2 = vld [vmem:[%s1832_s22] sm:$0xff]  ;;  %v1866_v6 = vld [vmem:[%s1832_s22 + $0x8] sm:$0xff]  ;;  %v1869_v7 = vld [vmem:[%s1832_s22 + $0x10] sm:$0xff]  ;;  %v1700_v35 = vmov 1.0   ;;  %vm324_vm6 = vcmask 130048  }
  0x2e   : > { %s1846_s20 = sld [smem:[#allocation6 + $0x1]]  ;;  %v1877_v11 = vld [vmem:[%s1832_s22 + $0x18] sm:$0xff]  ;;  %v1887_v15 = vld [vmem:[%s1832_s22 + $0x20] sm:$0xff]  ;;  %v1890_v16 = vld [vmem:[%s1832_s22 + $0x30] sm:$0xff] }
  0x2f   : > { %v1848_v1 = vshrl.u32 %v238_v0, 7  ;;  %s1850_s23 = sld [smem:[#allocation6 + $0x2]]  ;;  %v1857_v3 = vand.u32 127, %v238_v0  ;;  %v1905_v21 = vld [vmem:[%s1832_s22 + $0x28] sm:$0xff]  ;;  %v1913_v25 = vld [vmem:[%s1832_s22 + $0x38] sm:$0xff] }
  0x30   : > { %s1855_s29 = sld [smem:[#allocation6 + $0x3]] }
  0x31   : > { %v1860_v4 = vadd.s32 8, %v1848_v1  ;;  %v243_v5 = vmul.u32 2, %v1848_v1  ;;  %s1863_s21 = sld [smem:[#allocation7]] }
  0x32   : > { %s1871_s6 = sld [smem:[#allocation6 + $0x80]] }
  0x33   : > { %v244_v8 = vmul.u32 2, %v1860_v4  ;;  %v247_v9 = vadd.s32 1, %v243_v5  ;;  %v284_v10 = vstv %s283_s1  ;;  %s1874_s10 = sld [smem:[#allocation6 + $0x81]]  ;;  %vm1880_vm0 = vcmp.eq.s32.totalorder %v1857_v3, %v243_v5 }
  0x34   : > { %v285_v13 = vmul.f32 %v284_v10, %v1853_v2  ;;  %v291_v14 = vstv %s1846_s20  ;;  %s1892_s26 = sld [smem:[#allocation6 + $0x82]]  ;;  %v286_v17 = vmul.f32 %v284_v10, %v1866_v6 }
  0x35   : > { %vm1896_vm1 = vcmp.eq.s32.totalorder %v1857_v3, %v244_v8  ;;  %v248_v19 = vadd.s32 1, %v244_v8  ;;  %vm249_vm2 = vcmp.eq.s32.totalorder %v1857_v3, %v247_v9  ;;  %v292_v20 = vmul.f32 %v1869_v7, %v291_v14  ;;  %s1902_s27 = sld [smem:[#allocation6 + $0x83]] }
  0x36   : > { %v300_v22 = vstv %s1850_s23  ;;  %v309_v23 = vstv %s1855_s29  ;;  %s1909_s30 = sld [smem:[#allocation7 + $0x1]]  ;;  %v293_v24 = vmul.f32 %v1877_v11, %v291_v14  ;;  %vm1918_vm4 = vmor %vm1880_vm0, %vm249_vm2 }
  0x37   : > { %vm250_vm3 = vcmp.eq.s32.totalorder %v1857_v3, %v248_v19  ;;  %v294_v27 = vadd.f32 %v292_v20, %v285_v13  ;;  %v301_v28 = vmul.f32 %v1887_v15, %v300_v22  ;;  %v310_v29 = vmul.f32 %v1890_v16, %v309_v23  ;;  %s1308_s28 = sld [smem:[#allocation6 + $0x100]] }
  0x38   : > { %vm1926_vm5 = vmor %vm1896_vm1, %vm250_vm3  ;;  %v315_v31 = vstv %s1863_s21  ;;  %v403_v32 = vstv %s1871_s6  ;;  %v295_v33 = vadd.f32 %v293_v24, %v286_v17  ;;  %v302_v34 = vmul.f32 %v1905_v21, %v300_v22  ;;  %s1311_s4 = sld [smem:[#allocation6 + $0x101]] }
  0x39   : > { %1277 = vmatpush.msk.msra.mxu0 %vm1926_vm5, %v1700_v35  ;;  %1296 = vmatpush.msk.msra.mxu2 %vm1926_vm5, %v1700_v35  ;;  %v303_v36 = vadd.f32 %v301_v28, %v294_v27  ;;  %v404_v37 = vmul.f32 %v403_v32, %v1853_v2  ;;  %v409_v38 = vstv %s1874_s10  ;;  %v311_v39 = vmul.f32 %v1913_v25, %v309_v23  ;;  %s1314_s7 = sld [smem:[#allocation6 + $0x102]] }
  0x3a   : > { %v410_v40 = vmul.f32 %v1869_v7, %v409_v38  ;;  %v417_v41 = vstv %s1892_s26  ;;  %v304_v42 = vadd.f32 %v302_v34, %v295_v33  ;;  %v405_v43 = vmul.f32 %v403_v32, %v1866_v6  ;;  %s1974_s8 = sld [smem:[#allocation6 + $0x103]] }
  0x3b   : > { %1278 = vmatpush.msk.msra.mxu0 %vm1918_vm4, %v1700_v35  ;;  %1297 = vmatpush.msk.msra.mxu2 %vm1918_vm4, %v1700_v35  ;;  %v312_v44 = vadd.f32 %v310_v29, %v303_v36  ;;  %v418_v45 = vmul.f32 %v1887_v15, %v417_v41  ;;  %v425_v46 = vstv %s1902_s27  ;;  %v411_v47 = vmul.f32 %v1877_v11, %v409_v38  ;;  %s1976_s11 = sld [smem:[#allocation7 + $0x2]]  ;;  %s1261_s27 = sshll.u32 %s1828_s18, 8 }
  0x3c   : > { %v412_v48 = vadd.f32 %v410_v40, %v404_v37  ;;  %v426_v49 = vmul.f32 %v1890_v16, %v425_v46  ;;  %v313_v50 = vadd.f32 %v311_v39, %v304_v42  ;;  %v419_v53 = vmul.f32 %v1905_v21, %v417_v41  ;;  %s1989_s19 = sld [smem:[#allocation6 + $0x180]] }
  0x3d   : > { %1319 = vmatpush.msk.msrb.mxu0 %vm1926_vm5, %v1700_v35  ;;  %v316_v51 = vadd.f32 %v315_v31, %v312_v44  ;;  %v413_v52 = vadd.f32 %v411_v47, %v405_v43  ;;  %v427_v54 = vmul.f32 %v1913_v25, %v425_v46  ;;  %v431_v56 = vstv %s1909_s30  ;;  %s1991_s22 = sld [smem:[#allocation6 + $0x181]]  ;;  %s2079_s30 = scalar_lea.vmem [#allocation9], %s1261_s27 }
  0x3e   : > { %v420_v55 = vadd.f32 %v418_v45, %v412_v48  ;;  %v317_v58 = vadd.f32 %v315_v31, %v313_v50  ;;  %v506_v14 = vstv %s1308_s28  ;;  %v512_v17 = vstv %s1311_s4  ;;  %s1996_s1 = sld [smem:[#allocation6 + $0x182]]  ;;  %s1452_s27 = sshll.u32 %s1686_s15, 8 }
  0x3f   : > { %1320 = vmatpush.msk.msrb.mxu0 %vm1918_vm4, %v1700_v35  ;;  %vm318_vm7 = vcmp.gt.f32.partialorder %v316_v51, 0.0  ;;  %v320_v57 = vmul.f32 0.1, %v316_v51  ;;  %v421_v59 = vadd.f32 %v419_v53, %v413_v52  ;;  %v507_v18 = vmul.f32 %v506_v14, %v1853_v2  ;;  %s2003_s20 = sld [smem:[#allocation6 + $0x183]] }
  0x40   : > { %v428_v60 = vadd.f32 %v426_v49, %v420_v55  ;;  %v321_v0 = vmul.f32 0.1, %v317_v58  ;;  %vm319_vm9 = vcmp.gt.f32.partialorder %v317_v58, 0.0  ;;  %v513_v19 = vmul.f32 %v1869_v7, %v512_v17  ;;  %s2007_s23 = sld [smem:[#allocation7 + $0x3]] }
  0x41   : > { %v322_v61 = vsel %vm318_vm7, %v316_v51, %v320_v57  ;;  %v429_v62 = vadd.f32 %v427_v54, %v421_v59  ;;  %v1981_v20 = vmul.u32 2, %v1857_v3  ;;  %v520_v22 = vstv %s1314_s7  ;;  %s1354_s29 = sld [smem:[#allocation6 + $0x200]] }
  0x42   : > { %1279 = vmatmul.msk.f32.vlgmr.msra.gmra.mxu0 %vm324_vm6, %v322_v61  ;;  %v432_v63 = vadd.f32 %v431_v56, %v428_v60  ;;  %v323_v10 = vsel %vm319_vm9, %v317_v58, %v321_v0  ;;  %v515_v23 = vadd.f32 %v513_v19, %v507_v18  ;;  %v521_v24 = vmul.f32 %v1887_v15, %v520_v22  ;;  %s1357_s21 = sld [smem:[#allocation6 + $0x201]] }
  0x43   : > { %1342 = vmatpush.msk.msra.mxu0 %vm1926_vm5, %v1700_v35  ;;  %v433_v8 = vadd.f32 %v431_v56, %v429_v62  ;;  %v528_v27 = vstv %s1974_s8  ;;  %v257_v31 = vadd.s32 16, %v1848_v1  ;;  %v264_v32 = vadd.s32 1, %v1981_v20  ;;  %s1360_s6 = sld [smem:[#allocation6 + $0x202]] }
  0x44   : > { %vm434_vm8 = vcmp.gt.f32.partialorder %v432_v63, 0.0  ;;  %v436_v5 = vmul.f32 0.1, %v432_v63  ;;  %v523_v28 = vadd.f32 %v521_v24, %v515_v23  ;;  %v529_v29 = vmul.f32 %v1890_v16, %v528_v27  ;;  %s1363_s10 = sld [smem:[#allocation6 + $0x203]] }
  0x45   : > { %1343 = vmatpush.msk.msra.mxu0 %vm1918_vm4, %v1700_v35  ;;  %v437_v12 = vmul.f32 0.1, %v433_v8  ;;  %vm435_vm10 = vcmp.gt.f32.partialorder %v433_v8, 0.0  ;;  %v534_v33 = vstv %s1976_s11  ;;  %v508_v37 = vmul.f32 %v506_v14, %v1866_v6  ;;  %s1364_s26 = sld [smem:[#allocation7 + $0x4]] }
  0x46   : > { %v438_v9 = vsel %vm434_vm8, %v432_v63, %v436_v5  ;;  %v531_v36 = vadd.f32 %v529_v29, %v523_v28  ;;  %v514_v38 = vmul.f32 %v1877_v11, %v512_v17  ;;  %vm262_vm11 = vcmp.eq.s32.totalorder %v257_v31, %v1981_v20  ;;  %s2104_s28 = sld [smem:[#allocation6 + $0x280]] }
  0x47   : > { %1298 = vmatmul.msk.f32.vlgmr.msra.gmra.mxu2 %vm324_vm6, %v438_v9  ;;  %v439_v13 = vsel %vm435_vm10, %v433_v8, %v437_v12  ;;  %vm267_vm12 = vcmp.eq.s32.totalorder %v257_v31, %v264_v32  ;;  %v522_v41 = vmul.f32 %v1905_v21, %v520_v22  ;;  %vm260_vm14 = vcmp.eq.s32.totalorder %v1848_v1, %v1981_v20  ;;  %s2109_s4 = sld [smem:[#allocation6 + $0x281]] }
  0x48   : > { %v535_v3 = vadd.f32 %v534_v33, %v531_v36  ;;  %v516_v40 = vadd.f32 %v514_v38, %v508_v37  ;;  %vm265_vm15 = vcmp.eq.s32.totalorder %v1848_v1, %v264_v32  ;;  %v530_v42 = vmul.f32 %v1913_v25, %v528_v27  ;;  %vm271_vm0 = vmor %vm262_vm11, %vm267_vm12  ;;  %s2111_s7 = sld [smem:[#allocation6 + $0x282]] }
  0x49   : > { %v258_v45 = vadd.s32 24, %v1848_v1  ;;  %vm2009_vm1 = vmor %vm260_vm14, %vm265_vm15  ;;  %v1701_v49 = vmov 0.0   ;;  %v609_v51 = vstv %s1989_s19  ;;  %v615_v52 = vstv %s1991_s22  ;;  %s2117_s8 = sld [smem:[#allocation6 + $0x283]] }
  0x4a   : > { %1280 = vmatmul.msk.f32.gmra.mxu0 %vm324_vm6, %v323_v10  ;;  %vm537_vm13 = vcmp.gt.f32.partialorder %v535_v3, 0.0  ;;  %v539_v39 = vmul.f32 0.1, %v535_v3  ;;  %v524_v44 = vadd.f32 %v522_v41, %v516_v40  ;;  %v2013_v50 = vsel %vm271_vm0, 1.0, %v1701_v49  ;;  %s2121_s11 = sld [smem:[#allocation6 + $0x300]] }
  0x4b   : > { %v610_v1 = vmul.f32 %v609_v51, %v1853_v2  ;;  %v616_v54 = vmul.f32 %v1869_v7, %v615_v52  ;;  %vm263_vm2 = vcmp.eq.s32.totalorder %v258_v45, %v1981_v20  ;;  %vm268_vm3 = vcmp.eq.s32.totalorder %v258_v45, %v264_v32  ;;  %s2123_s19 = sld [smem:[#allocation6 + $0x301]] }
  0x4c   : > { %v541_v43 = vsel %vm537_vm13, %v535_v3, %v539_v39  ;;  %v532_v48 = vadd.f32 %v530_v42, %v524_v44  ;;  %v2022_v56 = vsel %vm2009_vm1, 1.0, %v1701_v49  ;;  %v623_v57 = vstv %s1996_s1  ;;  %vm272_vm10 = vmor %vm263_vm2, %vm268_vm3  ;;  %s2125_s22 = sld [smem:[#allocation7 + $0x5]] }
  0x4d   : > { %v618_v59 = vadd.f32 %v616_v54, %v610_v1  ;;  %v624_v60 = vmul.f32 %v1887_v15, %v623_v57  ;;  %vm261_vm8 = vcmp.eq.s32.totalorder %v1860_v4, %v1981_v20  ;;  %vm266_vm9 = vcmp.eq.s32.totalorder %v1860_v4, %v264_v32  ;;  %s2129_s1 = sld [smem:[#allocation6 + $0x302]] }
  0x4e   : > { %v536_v53 = vadd.f32 %v534_v33, %v532_v48  ;;  %v631_v61 = vstv %s2003_s20  ;;  %v637_v5 = vstv %s2007_s23  ;;  %vm270_vm11 = vmor %vm261_vm8, %vm266_vm9  ;;  %v2040_v9 = vsel %vm272_vm10, 1.0, %v1701_v49  ;;  %s2134_s20 = sld [smem:[#allocation6 + $0x303]] }
  0x4f   : > { %1299 = vmatmul.msk.f32.gmra.mxu2 %vm324_vm6, %v439_v13  ;;  %v626_v63 = vadd.f32 %v624_v60, %v618_v59  ;;  %v632_v0 = vmul.f32 %v1890_v16, %v631_v61  ;;  %v611_v12 = vmul.f32 %v609_v51, %v1866_v6  ;;  %v617_v4 = vmul.f32 %v1877_v11, %v615_v52  ;;  %s2145_s23 = sld [smem:[#allocation7 + $0x6]] }
  0x50   : > { %vm538_vm7 = vcmp.gt.f32.partialorder %v536_v53, 0.0  ;;  %v540_v58 = vmul.f32 0.1, %v536_v53  ;;  %v2044_v14 = vsel %vm270_vm11, 1.0, %v1701_v49  ;;  %v625_v19 = vmul.f32 %v1905_v21, %v623_v57 }
  0x51   : > { %v634_v8 = vadd.f32 %v632_v0, %v626_v63  ;;  %v619_v18 = vadd.f32 %v617_v4, %v611_v12  ;;  %v633_v20 = vmul.f32 %v1913_v25, %v631_v61  ;;  %v712_v31 = vstv %s1354_s29  ;;  %s1423_s29 = sld [smem:[#allocation6 + $0x380]] }
  0x52   : > { %1321 = vmatmul.msk.f32.vlgmr.msrb.gmra.mxu0 %vm324_vm6, %v541_v43  ;;  %v542_v62 = vsel %vm538_vm7, %v536_v53, %v540_v58  ;;  %v718_v32 = vstv %s1357_s21  ;;  %v713_v33 = vmul.f32 %v712_v31, %v1853_v2  ;;  %v726_v36 = vstv %s1360_s6  ;;  %s1426_s21 = sld [smem:[#allocation6 + $0x381]] }
  0x53   : > { %v638_v10 = vadd.f32 %v637_v5, %v634_v8  ;;  %v627_v23 = vadd.f32 %v625_v19, %v619_v18  ;;  %v727_v37 = vmul.f32 %v1887_v15, %v726_v36  ;;  %v734_v38 = vstv %s1363_s10  ;;  %s1429_s6 = sld [smem:[#allocation6 + $0x382]] }
  0x54   : > { %v735_v40 = vmul.f32 %v1890_v16, %v734_v38  ;;  %v714_v41 = vmul.f32 %v712_v31, %v1866_v6  ;;  %v720_v42 = vmul.f32 %v1877_v11, %v718_v32  ;;  %v728_v45 = vmul.f32 %v1905_v21, %v726_v36  ;;  %s1432_s10 = sld [smem:[#allocation6 + $0x383]] }
  0x55   : > { %vm640_vm12 = vcmp.gt.f32.partialorder %v638_v10, 0.0  ;;  %v642_v17 = vmul.f32 0.1, %v638_v10  ;;  %v635_v24 = vadd.f32 %v633_v20, %v627_v23  ;;  %v736_v49 = vmul.f32 %v1913_v25, %v734_v38 }
  0x56   : > { %v722_v44 = vadd.f32 %v720_v42, %v714_v41  ;;  %vm395_vm0 = vcmask 261120   ;;  %v821_v8 = vstv %s2109_s4  ;;  %v829_v4 = vstv %s2111_s7  ;;  %s1135_s7 = scalar_lea.hbm %s2313_s3, %s1452_s27 }
  0x57   : > { %v644_v22 = vsel %vm640_vm12, %v638_v10, %v642_v17  ;;  %v639_v27 = vadd.f32 %v637_v5, %v635_v24  ;;  %v815_v5 = vstv %s2104_s28  ;;  %v822_v12 = vmul.f32 %v1869_v7, %v821_v8 }
  0x58   : > { %v730_v48 = vadd.f32 %v728_v45, %v722_v44  ;;  %v816_v10 = vmul.f32 %v815_v5, %v1853_v2  ;;  %v830_v17 = vmul.f32 %v1887_v15, %v829_v4  ;;  %v837_v19 = vstv %s2117_s8  ;;  %s1136_s8 = sshll.u32 %s2079_s30, 4  ;;  %s1137_s8 = int_to_ptr.vmem [resolvable:$true] %s1136_s8 }
  0x59   : > { %vm641_vm13 = vcmp.gt.f32.partialorder %v639_v27, 0.0  ;;  %v643_v28 = vmul.f32 0.1, %v639_v27  ;;  %v918_v23 = vstv %s2121_s11  ;;  %v924_v24 = vstv %s2123_s19  ;;  %s1138_s11 = sshll.u32 %s1135_s7, 4  ;;  %s1122_s19 = scalar_lea.sflag [#allocation4], %s1828_s18  ;;  %s1139_s11 = int_to_ptr.hbm [resolvable:$true] %s1138_s11 }
  0x5a   : > { %1322 = vmatmul.msk.f32.gmra.mxu0 %vm324_vm6, %v542_v62  ;;  %v738_v52 = vadd.f32 %v736_v49, %v730_v48  ;;  %v843_v31 = vstv %s2125_s22  ;;  %v823_v38 = vmul.f32 %v1877_v11, %v821_v8  ;;  %v831_v44 = vmul.f32 %v1905_v21, %v829_v4  ;;  %s1618_s22 = sshra.s32 %s1139_s11, 4  ;;  %s1619_s22 = int_to_ptr.hbm [resolvable:$true] %s1618_s22 }
  0x5b   : > { %v645_v29 = vsel %vm641_vm13, %v639_v27, %v643_v28  ;;  %v919_v28 = vmul.f32 %v918_v23, %v1853_v2  ;;  %v946_v48 = vstv %s2145_s23  ;;  %s1624_s23 = scalar_lea.hbm %s2313_s3, 512  ;;  %p1625_p11 = scmp.lt.s32.totalorder %s1619_s22, %s2313_s3 }
  0x62   : > { %1344 = vmatmul.msk.f32.vlgmr.msra.gmra.mxu0 %vm324_vm6, %v644_v22  ;;  %v838_v22 = vmul.f32 %v1890_v16, %v837_v19 }
  0x6a   : > { %1345 = vmatmul.msk.f32.gmra.mxu0 %vm324_vm6, %v645_v29  ;;  %v925_v29 = vmul.f32 %v1869_v7, %v924_v24 }
  0xbf   : > { %v348_v34 = vpop.f32.mrf.mxu0 }
  0xc7   : > { %v351_v46 = vpop.f32.mrf.mxu0 }
  0xc8   : > { %380 = vmatpush.msra.mxu1 %v351_v46  ;;  %1453 = vmatpush.msra.mxu3 %v351_v46  ;;  %v740_v46 = vstv %s1364_s26  ;;  %s1433_s26 = sld [smem:[#allocation7 + $0x7]] }
  0xc9   : > { %v742_v1 = vadd.f32 %v740_v46, %v738_v52  ;;  %v920_v52 = vmul.f32 %v918_v23, %v1866_v6 }
  0xca   : > { %v463_v55 = vpop.f32.mrf.mxu2  ;;  %381 = vmatpush.msra.mxu1 %v348_v34  ;;  %1454 = vmatpush.msra.mxu3 %v348_v34  ;;  %v719_v34 = vmul.f32 %v1869_v7, %v718_v32  ;;  %v932_v32 = vstv %s2129_s1  ;;  %s1620_s1 = scalar_lea.hbm %s1619_s22, 256 }
  0xcb   : > { %1283 = vmatmul.msk.f32.vlgmr.msra.gmra.mxu3 %vm324_vm6, %v2013_v50  ;;  %1281 = vmatmul.msk.f32.vlgmr.msra.gmra.mxu1 %vm324_vm6, %v2022_v56  ;;  %v746_v54 = vmul.f32 0.1, %v742_v1  ;;  %vm744_vm15 = vcmp.gt.f32.partialorder %v742_v1, 0.0  ;;  %v933_v36 = vmul.f32 %v1887_v15, %v932_v32  ;;  %p1621_p3 = scmp.ne.s32.totalorder %s1619_s22, %s1620_s1  ;;  %p1626_p12 = scmp.lt.s32.totalorder %s1624_s23, %s1620_s1 }
  0xcc   : > { %v721_v3 = vadd.f32 %v719_v34, %v713_v33  ;;  %v927_v34 = vadd.f32 %v925_v29, %v919_v28 }
  0xcd   : > { %p1622_p7 = pnand %p1621_p3, %p1776_p8  ;;  %p1627_p0 = por %p1626_p12, %p1625_p11 }
  0xce   : > { %v729_v39 = vadd.f32 %v727_v37, %v721_v3  ;;  %v817_v3 = vmul.f32 %v815_v5, %v1866_v6  ;;  %v940_v37 = vstv %s2134_s20 }
  0xcf   : > { %v566_v57 = vpop.f32.mrf.mxu0  ;;  %v941_v41 = vmul.f32 %v1890_v16, %v940_v37  ;;  %p1623_p10 = pneg %p1622_p7 }
  0xd0   : > { %v737_v43 = vadd.f32 %v735_v40, %v729_v39  ;;  %v935_v40 = vadd.f32 %v933_v36, %v927_v34 }
  0xd1   : > { %p1628_p1 = pnand %p1627_p0, %p1623_p10 }
  0xd2   : > { %v466_v13 = vpop.f32.mrf.mxu2  ;;  %v741_v47 = vadd.f32 %v740_v46, %v737_v43  ;;  %v825_v43 = vadd.f32 %v823_v38, %v817_v3  ;;  %v943_v46 = vadd.f32 %v941_v41, %v935_v40 }
  0xd3   : > { %483 = vmatpush.msrb.mxu3 %v466_v13  ;;  %1282 = vmatmul.msk.f32.gmra.mxu1 %vm324_vm6, %v2044_v14  ;;  %v824_v13 = vadd.f32 %v822_v12, %v816_v10 }
  0xd4   : > { %1284 = vmatmul.msk.f32.gmra.mxu3 %vm324_vm6, %v2040_v9  ;;  %v745_v51 = vmul.f32 0.1, %v741_v47  ;;  %vm743_vm14 = vcmp.gt.f32.partialorder %v741_v47, 0.0  ;;  %v833_v49 = vadd.f32 %v831_v44, %v825_v43 }
  0xd5   : > { %484 = vmatpush.msrb.mxu3 %v463_v55  ;;  %v748_v55 = vsel %vm744_vm15, %v742_v1, %v746_v54  ;;  %v832_v20 = vadd.f32 %v830_v17, %v824_v13  ;;  %v1021_v13 = vstv %s1423_s29  ;;  %v1027_v17 = vstv %s1426_s21 }
  0xd6   : > { %v747_v53 = vsel %vm743_vm14, %v741_v47, %v745_v51  ;;  %v839_v47 = vmul.f32 %v1913_v25, %v837_v19  ;;  %v947_v51 = vadd.f32 %v946_v48, %v943_v46  ;;  %v1028_v19 = vmul.f32 %v1869_v7, %v1027_v17 }
  0xd7   : > { %1365 = vmatpush.msk.msra.mxu3 %vm1926_vm5, %v1700_v35  ;;  %v569_v58 = vpop.f32.mrf.mxu0  ;;  %v840_v27 = vadd.f32 %v838_v22, %v832_v20  ;;  %v1035_v20 = vstv %s1429_s6  ;;  %v1029_v7 = vmul.f32 %v1877_v11, %v1027_v17 }
  0xd8   : > { %586 = vmatpush.msrb.mxu2 %v569_v58  ;;  %v841_v1 = vadd.f32 %v839_v47, %v833_v49  ;;  %vm949_vm2 = vcmp.gt.f32.partialorder %v947_v51, 0.0  ;;  %v951_v54 = vmul.f32 0.1, %v947_v51  ;;  %v1036_v30 = vmul.f32 %v1887_v15, %v1035_v20 }
  0xd9   : > { %1366 = vmatpush.msk.msra.mxu3 %vm1918_vm4, %v1700_v35  ;;  %v844_v33 = vadd.f32 %v843_v31, %v840_v27  ;;  %v1049_v15 = vstv %s1433_s26 }
  0xda   : > { %587 = vmatpush.msrb.mxu2 %v566_v57  ;;  %v934_v57 = vmul.f32 %v1905_v21, %v932_v32  ;;  %v845_v58 = vadd.f32 %v843_v31, %v841_v1  ;;  %v1037_v31 = vmul.f32 %v1905_v21, %v1035_v20 }
  0xdb   : > { %1323 = vmatmul.msk.f32.vlgmr.msrb.gmra.mxu2 %vm324_vm6, %v2022_v56  ;;  %vm846_vm1 = vcmp.gt.f32.partialorder %v844_v33, 0.0  ;;  %v848_v39 = vmul.f32 0.1, %v844_v33 }
  0xdc   : > { %1300 = vmatmul.msk.f32.vlgmr.msrb.gmra.mxu3 %vm324_vm6, %v2022_v56  ;;  %1388 = vmatpush.msk.msra.mxu2 %vm1926_vm5, %v1700_v35  ;;  %vm847_vm3 = vcmp.gt.f32.partialorder %v845_v58, 0.0 }
  0xdd   : > { %v850_v45 = vsel %vm846_vm1, %v844_v33, %v848_v39 }
  0xde   : > { %1389 = vmatpush.msk.msra.mxu2 %vm1918_vm4, %v1700_v35 }
  0xdf   : > { %v669_v60 = vpop.f32.mrf.mxu0 }
  0xe3   : > { %1324 = vmatmul.msk.f32.gmra.mxu2 %vm324_vm6, %v2044_v14 }
  0xe4   : > { %1301 = vmatmul.msk.f32.gmra.mxu3 %vm324_vm6, %v2044_v14 }
  0xe7   : > { %v672_v62 = vpop.f32.mrf.mxu0 }
  0xe8   : > { %689 = vmatpush.msrb.mxu1 %v672_v62 }
  0xea   : > { %690 = vmatpush.msrb.mxu1 %v669_v60 }
  0xeb   : > { %1346 = vmatmul.msk.f32.vlgmr.msrb.gmra.mxu1 %vm324_vm6, %v2022_v56  ;;  %1325 = vmatmul.msk.f32.gmra.mxu2 %vm324_vm6, %v2013_v50 }
  0xec   : > { %1302 = vmatmul.msk.f32.gmra.mxu3 %vm324_vm6, %v2013_v50  ;;  %1411 = vmatpush.msk.msra.mxu1 %vm1926_vm5, %v1700_v35 }
  0xee   : > { %1412 = vmatpush.msk.msra.mxu1 %vm1918_vm4, %v1700_v35 }
  0xf3   : > { %1347 = vmatmul.msk.f32.gmra.mxu1 %vm324_vm6, %v2044_v14  ;;  %1326 = vmatmul.msk.f32.gmra.mxu2 %vm324_vm6, %v2040_v9 }
  0xf4   : > { %1303 = vmatmul.msk.f32.gmra.mxu3 %vm324_vm6, %v2040_v9 }
  0xfb   : > { %1348 = vmatmul.msk.f32.gmra.mxu1 %vm324_vm6, %v2013_v50  ;;  %1390 = vmatmul.msk.f32.vlgmr.msra.gmra.mxu2 %vm324_vm6, %v850_v45 }
  0xfc   : > { %1367 = vmatmul.msk.f32.vlgmr.msra.gmra.mxu3 %vm324_vm6, %v747_v53  ;;  %v926_v53 = vmul.f32 %v1877_v11, %v924_v24  ;;  %v1043_v24 = vstv %s1432_s10 }
  0xfd   : > { %v1044_v26 = vmul.f32 %v1890_v16, %v1043_v24  ;;  %v1045_v16 = vmul.f32 %v1913_v25, %v1043_v24 }
 0x103   : > { %1349 = vmatmul.msk.f32.gmra.mxu1 %vm324_vm6, %v2040_v9 }
 0x104   : > { %1368 = vmatmul.msk.f32.gmra.mxu3 %vm324_vm6, %v748_v55  ;;  %v928_v55 = vadd.f32 %v926_v53, %v920_v52 }
 0x106   : > { %v936_v60 = vadd.f32 %v934_v57, %v928_v55 }
 0x148   : > { %v383_v22 = vpop.f32.mrf.mxu1 }
 0x149   : > { %396 = vst.msk [vmem:[%s2079_s30] sm:$0xff] %vm395_vm0, %v383_v22 }
 0x14e   : > { %v389_v59 = vpop.f32.mrf.mxu3 }
 0x14f   : > { %398 = vst.msk [vmem:[%s2079_s30 + $0x10] sm:$0xff] %vm395_vm0, %v389_v59  ;;  %v953_v59 = vsel %vm949_vm2, %v947_v51, %v951_v54 }
 0x150   : > { %1413 = vmatmul.msk.f32.vlgmr.msra.gmra.mxu1 %vm324_vm6, %v953_v59 }
 0x157   : > { %v392_v61 = vpop.f32.mrf.mxu3 }
 0x158   : > { %399 = vst.msk [vmem:[%s2079_s30 + $0x18] sm:$0xff] %vm395_vm0, %v392_v61  ;;  %v942_v61 = vmul.f32 %v1913_v25, %v940_v37 }
 0x15e   : > { %v589_v25 = vpop.f32.mrf.mxu2 }
 0x15f   : > { %v486_v63 = vpop.f32.mrf.mxu3  ;;  %1327 = vst.msk [vmem:[%s2079_s30 + $0x40] sm:$0xff] %vm395_vm0, %v589_v25 }
 0x160   : > { %1304 = vst.msk [vmem:[%s2079_s30 + $0x20] sm:$0xff] %vm395_vm0, %v486_v63  ;;  %v849_v63 = vmul.f32 0.1, %v845_v58 }
 0x162   : > { %v851_v5 = vsel %vm847_vm3, %v845_v58, %v849_v63 }
 0x163   : > { %1391 = vmatmul.msk.f32.gmra.mxu2 %vm324_vm6, %v851_v5 }
 0x166   : > { %v592_v37 = vpop.f32.mrf.mxu2 }
 0x167   : > { %v489_v0 = vpop.f32.mrf.mxu3  ;;  %1328 = vst.msk [vmem:[%s2079_s30 + $0x48] sm:$0xff] %vm395_vm0, %v592_v37 }
 0x168   : > { %1305 = vst.msk [vmem:[%s2079_s30 + $0x28] sm:$0xff] %vm395_vm0, %v489_v0  ;;  %v944_v0 = vadd.f32 %v942_v61, %v936_v60 }
 0x16a   : > { %v948_v8 = vadd.f32 %v946_v48, %v944_v0 }
 0x16c   : > { %vm950_vm7 = vcmp.gt.f32.partialorder %v948_v8, 0.0  ;;  %v952_v10 = vmul.f32 0.1, %v948_v8 }
 0x16e   : > { %v954_v12 = vsel %vm950_vm7, %v948_v8, %v952_v10  ;;  %v595_v39 = vpop.f32.mrf.mxu2 }
 0x16f   : > { %v492_v18 = vpop.f32.mrf.mxu3  ;;  %1414 = vmatmul.msk.f32.gmra.mxu1 %vm324_vm6, %v954_v12  ;;  %1329 = vst.msk [vmem:[%s2079_s30 + $0x50] sm:$0xff] %vm395_vm0, %v595_v39 }
 0x170   : > { %1306 = vst.msk [vmem:[%s2079_s30 + $0x30] sm:$0xff] %vm395_vm0, %v492_v18  ;;  %v1022_v18 = vmul.f32 %v1021_v13, %v1853_v2  ;;  %v1023_v2 = vmul.f32 %v1021_v13, %v1866_v6 }
 0x172   : > { %v1030_v23 = vadd.f32 %v1028_v19, %v1022_v18  ;;  %v1031_v29 = vadd.f32 %v1029_v7, %v1023_v2 }
 0x174   : > { %v1038_v27 = vadd.f32 %v1036_v30, %v1030_v23  ;;  %v1039_v33 = vadd.f32 %v1037_v31, %v1031_v29 }
 0x176   : > { %v1046_v28 = vadd.f32 %v1044_v26, %v1038_v27  ;;  %v1047_v11 = vadd.f32 %v1045_v16, %v1039_v33  ;;  %v598_v41 = vpop.f32.mrf.mxu2 }
 0x177   : > { %v495_v42 = vpop.f32.mrf.mxu3  ;;  %1330 = vst.msk [vmem:[%s2079_s30 + $0x58] sm:$0xff] %vm395_vm0, %v598_v41 }
 0x178   : > { %1307 = vst.msk [vmem:[%s2079_s30 + $0x38] sm:$0xff] %vm395_vm0, %v495_v42  ;;  %v1050_v32 = vadd.f32 %v1049_v15, %v1046_v28  ;;  %v1051_v21 = vadd.f32 %v1049_v15, %v1047_v11 }
 0x17a   : > { %v1054_v6 = vmul.f32 0.1, %v1050_v32  ;;  %v1055_v36 = vmul.f32 0.1, %v1051_v21 }
 0x17e   : > { %v875_v44 = vpop.f32.mrf.mxu2 }
 0x17f   : > { %v772_v62 = vpop.f32.mrf.mxu3 }
 0x187   : > { %v775_v4 = vpop.f32.mrf.mxu3 }
 0x188   : > { %792 = vmatpush.msrb.mxu0 %v775_v4 }
 0x18a   : > { %793 = vmatpush.msrb.mxu0 %v772_v62 }
 0x18b   : > { %1369 = vmatmul.msk.f32.vlgmr.msrb.gmra.mxu0 %vm324_vm6, %v2022_v56 }
 0x18c   : > { %1434 = vmatpush.msk.msra.mxu0 %vm1926_vm5, %v1700_v35  ;;  %vm1053_vm5 = vcmp.gt.f32.partialorder %v1051_v21, 0.0 }
 0x18d   : > { %v1057_v3 = vsel %vm1053_vm5, %v1051_v21, %v1055_v36 }
 0x18e   : > { %1435 = vmatpush.msk.msra.mxu0 %vm1918_vm4, %v1700_v35  ;;  %v386_v35 = vpop.f32.mrf.mxu1  ;;  %vm1052_vm4 = vcmp.gt.f32.partialorder %v1050_v32, 0.0 }
 0x18f   : > { %397 = vst.msk [vmem:[%s2079_s30 + $0x8] sm:$0xff] %vm395_vm0, %v386_v35  ;;  %v1056_v34 = vsel %vm1052_vm4, %v1050_v32, %v1054_v6 }
 0x193   : > { %1370 = vmatmul.msk.f32.gmra.mxu0 %vm324_vm6, %v2044_v14 }
 0x196   : > { %v692_v38 = vpop.f32.mrf.mxu1 }
 0x197   : > { %1350 = vst.msk [vmem:[%s2079_s30 + $0x60] sm:$0xff] %vm395_vm0, %v692_v38 }
 0x19b   : > { %1371 = vmatmul.msk.f32.gmra.mxu0 %vm324_vm6, %v2013_v50 }
 0x19e   : > { %v695_v40 = vpop.f32.mrf.mxu1 }
 0x19f   : > { %1351 = vst.msk [vmem:[%s2079_s30 + $0x68] sm:$0xff] %vm395_vm0, %v695_v40 }
 0x1a3   : > { %1372 = vmatmul.msk.f32.gmra.mxu0 %vm324_vm6, %v2040_v9 }
 0x1a6   : > { %v698_v42 = vpop.f32.mrf.mxu1 }
 0x1a7   : > { %1352 = vst.msk [vmem:[%s2079_s30 + $0x70] sm:$0xff] %vm395_vm0, %v698_v42 }
 0x1ab   : > { %1436 = vmatmul.msk.f32.vlgmr.msra.gmra.mxu0 %vm324_vm6, %v1056_v34 }
 0x1ae   : > { %v701_v43 = vpop.f32.mrf.mxu1 }
 0x1af   : > { %1353 = vst.msk [vmem:[%s2079_s30 + $0x78] sm:$0xff] %vm395_vm0, %v701_v43 }
 0x1b3   : > { %1437 = vmatmul.msk.f32.gmra.mxu0 %vm324_vm6, %v1057_v3 }
 0x1cd   : > { %v978_v45 = vpop.f32.mrf.mxu1 }
 0x1e6   : > { %v878_v47 = vpop.f32.mrf.mxu2 }
 0x1e7   : > { %895 = vmatpush.msrb.mxu3 %v878_v47 }
 0x1e9   : > { %896 = vmatpush.msrb.mxu3 %v875_v44 }
 0x1ea   : > { %1392 = vmatmul.msk.f32.vlgmr.msrb.gmra.mxu3 %vm324_vm6, %v2022_v56 }
 0x1ec   : > { %v981_v46 = vpop.f32.mrf.mxu1 }
 0x1ed   : > { %998 = vmatpush.msrb.mxu2 %v981_v46 }
 0x1ef   : > { %999 = vmatpush.msrb.mxu2 %v978_v45 }
 0x1f0   : > { %1415 = vmatmul.msk.f32.vlgmr.msrb.gmra.mxu2 %vm324_vm6, %v2022_v56 }
 0x1f2   : > { %1393 = vmatmul.msk.f32.gmra.mxu3 %vm324_vm6, %v2044_v14 }
 0x1f8   : > { %1416 = vmatmul.msk.f32.gmra.mxu2 %vm324_vm6, %v2044_v14 }
 0x1fa   : > { %1394 = vmatmul.msk.f32.gmra.mxu3 %vm324_vm6, %v2013_v50 }
 0x200   : > { %1417 = vmatmul.msk.f32.gmra.mxu2 %vm324_vm6, %v2013_v50 }
 0x202   : > { %1395 = vmatmul.msk.f32.gmra.mxu3 %vm324_vm6, %v2040_v9 }
 0x208   : > { %v795_v48 = vpop.f32.mrf.mxu0  ;;  %1418 = vmatmul.msk.f32.gmra.mxu2 %vm324_vm6, %v2040_v9 }
 0x209   : > { %1373 = vst.msk [vmem:[%s2079_s30 + $0x80] sm:$0xff] %vm395_vm0, %v795_v48 }
 0x210   : > { %v798_v49 = vpop.f32.mrf.mxu0 }
 0x211   : > { %1374 = vst.msk [vmem:[%s2079_s30 + $0x88] sm:$0xff] %vm395_vm0, %v798_v49 }
 0x218   : > { %v801_v51 = vpop.f32.mrf.mxu0 }
 0x219   : > { %1375 = vst.msk [vmem:[%s2079_s30 + $0x90] sm:$0xff] %vm395_vm0, %v801_v51 }
 0x220   : > { %v804_v52 = vpop.f32.mrf.mxu0 }
 0x221   : > { %1376 = vst.msk [vmem:[%s2079_s30 + $0x98] sm:$0xff] %vm395_vm0, %v804_v52 }
 0x228   : > { %v1081_v53 = vpop.f32.mrf.mxu0 }
 0x230   : > { %v1084_v1 = vpop.f32.mrf.mxu0 }
 0x231   : > { %1101 = vmatpush.msrb.mxu1 %v1084_v1 }
 0x233   : > { %1102 = vmatpush.msrb.mxu1 %v1081_v53 }
 0x234   : > { %1438 = vmatmul.msk.f32.vlgmr.msrb.gmra.mxu1 %vm324_vm6, %v2022_v56 }
 0x23c   : > { %1439 = vmatmul.msk.f32.gmra.mxu1 %vm324_vm6, %v2044_v14 }
 0x244   : > { %1440 = vmatmul.msk.f32.gmra.mxu1 %vm324_vm6, %v2013_v50 }
 0x24c   : > { %1441 = vmatmul.msk.f32.gmra.mxu1 %vm324_vm6, %v2040_v9 }
 0x26d   : > { %v898_v55 = vpop.f32.mrf.mxu3 }
 0x26e   : > { %1396 = vst.msk [vmem:[%s2079_s30 + $0xa0] sm:$0xff] %vm395_vm0, %v898_v55 }
 0x273   : > { %v1001_v54 = vpop.f32.mrf.mxu2 }
 0x274   : > { %1419 = vst.msk [vmem:[%s2079_s30 + $0xc0] sm:$0xff] %vm395_vm0, %v1001_v54 }
 0x275   : > { %v901_v57 = vpop.f32.mrf.mxu3 }
 0x276   : > { %1397 = vst.msk [vmem:[%s2079_s30 + $0xa8] sm:$0xff] %vm395_vm0, %v901_v57 }
 0x27b   : > { %v1004_v56 = vpop.f32.mrf.mxu2 }
 0x27c   : > { %1420 = vst.msk [vmem:[%s2079_s30 + $0xc8] sm:$0xff] %vm395_vm0, %v1004_v56 }
 0x27d   : > { %v904_v9 = vpop.f32.mrf.mxu3 }
 0x27e   : > { %1398 = vst.msk [vmem:[%s2079_s30 + $0xb0] sm:$0xff] %vm395_vm0, %v904_v9 }
 0x283   : > { %v1007_v50 = vpop.f32.mrf.mxu2 }
 0x284   : > { %1421 = vst.msk [vmem:[%s2079_s30 + $0xd0] sm:$0xff] %vm395_vm0, %v1007_v50 }
 0x285   : > { %v907_v58 = vpop.f32.mrf.mxu3 }
 0x286   : > { %1399 = vst.msk [vmem:[%s2079_s30 + $0xb8] sm:$0xff] %vm395_vm0, %v907_v58 }
 0x28b   : > { %v1010_v14 = vpop.f32.mrf.mxu2 }
 0x28c   : > { %1422 = vst.msk [vmem:[%s2079_s30 + $0xd8] sm:$0xff] %vm395_vm0, %v1010_v14 }
 0x2b1   : > { %v1104_v59 = vpop.f32.mrf.mxu1 }
 0x2b2   : > { %1442 = vst.msk [vmem:[%s2079_s30 + $0xe0] sm:$0xff] %vm395_vm0, %v1104_v59 }
 0x2b9   : > { %v1107_v60 = vpop.f32.mrf.mxu1 }
 0x2ba   : > { %1443 = vst.msk [vmem:[%s2079_s30 + $0xe8] sm:$0xff] %vm395_vm0, %v1107_v60 }
 0x2c1   : > { %v1110_v61 = vpop.f32.mrf.mxu1 }
 0x2c2   : > { %1444 = vst.msk [vmem:[%s2079_s30 + $0xf0] sm:$0xff] %vm395_vm0, %v1110_v61 }
 0x2c9   : > { %v1113_v62 = vpop.f32.mrf.mxu1 }
 0x2ca   : > { %1445 = vst.msk [vmem:[%s2079_s30 + $0xf8] sm:$0xff] %vm395_vm0, %v1113_v62 }
 0x2cb   : > { %1631 = shalt.err (!%p1628_p1)
}
 0x2cc   : > { %s1702_s18 = smov 128   ;;  %s1703_s30 = smov 8  }
 0x2cd   : > { %1465 = dma.vmem_to_hbm [thread:$0]  (%p1776_p8), %s1137_s8, 4096, %s1139_s11, %s1122_s19, %s1702_s18, %s1702_s18, %s1703_s30  }
 0x2ce PF: > { %s1153_s6 = sand.u32 1, %s1674_s12   ;;  %p1479_p2 = pnand %p1253_p13, %p1780_p9 }
 0x2cf   : > { %s1154_s10 = scalar_lea.sflag [#allocation4], %s1153_s6 }
 0x2d0   : > { %p1480_p4 = pneg %p1479_p2 }
 0x2d2   : > { %1669 = dma.done.wait (%p1480_p4), %s1154_s10, 4096  }
 0x2d3   : > { %1671 = vsyncadd (%p1480_p4), %s1154_s10, 4294963200  ;;  %s21_s17 = sadd.s32 1, %s1694_s17   ;;  %s2333_s12 = smov %s1678_s13 }
 0x2d4   : > { %p18_p6 = scmp.ge.s32.totalorder %s21_s17, 4   ;;  %s2334_s13 = smov %s1682_s14 }
 0x2d5   : > { %s2335_s14 = smov %s1821_s5  ;;  %s2336_s15 = smov %s1690_s16 }
 0x2d6   : > { %s2337_s16 = smov %s2339_s9  ;;  %20 = sbr.rel (!%p18_p6) target bundleno = 10 (0xa), region = 96 }
 0x2db   :  { %1160 = vsyncpa [#allocation3], 1 }
 0x2dc   :  { %1162 = vsyncpa [#allocation3 + $0x1], 1 }
 0x2dd   :  { %1163 = vsyncpa [#allocation4], 1 }
 0x2de   :  { %1165 = vsyncpa [#allocation4 + $0x1], 1 }
 0x2df   :  { %1166 = vsyncpa [#allocation5], 1 }
 0x2e0   :  { %1168 = vsyncpa [#allocation5 + $0x1], 1 }
 0x2e1   :  { %1169 = vsyncpa [#allocation8], 1 }

</bundles_post_ra>
